<compile_context>
chip_gen: v5e
topology: v5e:2x2
jax: 0.10.0
libtpu: 0.0.40
codegen_flags: <defaults>
</compile_context>

<pallas_src>
import functools

import jax
import jax.numpy as jnp
from jax.experimental import pallas as pl
from jax.experimental.pallas import tpu as pltpu

LN_EPS = 1e-5     # RoBERTa layer_norm_eps
PAD_IDX = 1       # RoBERTa padding token / padding_idx
LOGIT_PAD = 128   # lane-dense classifier output width


def _layer_norm2d(x2, g, b):
    """LayerNorm over the last dim of a 2-D [rows, H] f32 value."""
    mu = jnp.mean(x2, axis=-1, keepdims=True)
    var = jnp.mean((x2 - mu) ** 2, axis=-1, keepdims=True)
    return (x2 - mu) * jax.lax.rsqrt(var + LN_EPS) * g + b


# ---------------------------------------------------------------------------
# Kernel: full RoBERTa encoder + classifier head, grid = (batch_block, layer)
# ---------------------------------------------------------------------------
def encoder_stack_kernel(x_ref, bias_ref, embg_ref, embb_ref,
                         wqkv_ref, wo_ref, wi_ref, wf_ref, vec_ref,
                         fcw_ref, fcb_ref,
                         logits_ref, h_state, ctx_scr, *, num_heads):
    """The layer axis is the inner "arbitrary" axis: the hidden state of the TB
    sequences in this batch block is carried across layer iterations in the
    `h_state` VMEM scratch; per-layer weight blocks are indexed by the layer id
    so the pipeliner prefetches layer l+1's weights while layer l computes.
    Only the final layer writes to HBM, and then only the [TB, 128] logits.
    """
    R, H = h_state.shape                 # R = TB * S rows
    TB, _, S = bias_ref.shape
    NH = num_heads
    HD = H // NH
    F = wi_ref.shape[-1]
    scale = 1.0 / (HD ** 0.5)
    layer = pl.program_id(1)

    # Embedding LayerNorm fused into the first layer iteration of each block.
    @pl.when(layer == 0)
    def _():
        h_state[...] = _layer_norm2d(x_ref[...].reshape(R, H),
                                     embg_ref[...], embb_ref[...])

    x = h_state[...]                      # [R, H] f32
    xb = x.astype(jnp.bfloat16)           # packed once per layer

    # Packed per-layer vectors (one DMA per layer).  Row layout:
    #   0: bqkv[:3H]  1: bo[:H]  2: ln1_g[:H]  3: ln1_b[:H]
    #   4: bi[:F]     5: bf[:H]  6: ln2_g[:H]  7: ln2_b[:H]
    vecs = vec_ref[0]                     # [8, max(3H, F)] f32
    bqkv = vecs[0:1, :3 * H]
    bo = vecs[1:2, :H]
    ln1g, ln1b = vecs[2:3, :H], vecs[3:4, :H]
    bi = vecs[4:5, :F]
    bf_ = vecs[5:6, :H]
    ln2g, ln2b = vecs[6:7, :H], vecs[7:8, :H]

    # --- Fused Q/K/V projection: one MXU pass with N = 3H ---------------
    qkv = jnp.dot(xb, wqkv_ref[0],
                  preferred_element_type=jnp.float32) + bqkv       # [R, 3H] f32
    q, k, v = qkv[:, :H], qkv[:, H:2 * H], qkv[:, 2 * H:]

    def split_heads(t2):                  # [S, H] -> [NH, S, HD] bf16
        return t2.reshape(S, NH, HD).transpose(1, 0, 2).astype(jnp.bfloat16)

    # --- Multi-head self attention (head-batched, per sequence of block) ---
    # TODO(synk): at S >= 256, tile the query dim (online softmax) so the
    # [NH, S, S] score tensor stays within the v7x 64 MiB VMEM budget.
    for b in range(TB):                   # static unroll; TB is small
        rows = slice(b * S, (b + 1) * S)
        qh, kh, vh = split_heads(q[rows]), split_heads(k[rows]), split_heads(v[rows])
        s = jnp.einsum('hqd,hkd->hqk', qh, kh,
                       preferred_element_type=jnp.float32) * scale
        s = s + bias_ref[b].reshape(1, 1, S)          # additive key mask
        s = s - jnp.max(s, axis=-1, keepdims=True)
        p = jnp.exp(s)
        p = p * pl.reciprocal(jnp.sum(p, axis=-1, keepdims=True), approx=True)
        ctx = jnp.einsum('hqk,hkd->hqd', p.astype(jnp.bfloat16), vh,
                         preferred_element_type=jnp.float32)       # [NH, S, HD]
        ctx_scr[rows, :] = ctx.transpose(1, 0, 2).reshape(S, H)

    # Attention output projection + residual + LayerNorm (dropout == identity).
    attn = jnp.dot(ctx_scr[...].astype(jnp.bfloat16), wo_ref[0],
                   preferred_element_type=jnp.float32) + bo
    h1 = _layer_norm2d(x + attn, ln1g, ln1b)
    h1b = h1.astype(jnp.bfloat16)         # packed once

    # Feed-forward + residual + LayerNorm.
    # TODO(synk): HF RoBERTa uses exact erf-GELU; tanh-approx GELU used here.
    # TODO(synk): at RoBERTa-base sizes, chunk the F dimension so the wi/wf
    # blocks + [R, F] intermediate fit the v7x 64 MiB VMEM budget.
    inter = jax.nn.gelu(jnp.dot(h1b, wi_ref[0],
                                preferred_element_type=jnp.float32) + bi)
    ffn = jnp.dot(inter.astype(jnp.bfloat16), wf_ref[0],
                  preferred_element_type=jnp.float32) + bf_
    out = _layer_norm2d(h1 + ffn, ln2g, ln2b)          # [R, H]

    h_state[...] = out

    # Final layer: CLS row of each sequence -> lane-padded logits (fused head).
    @pl.when(layer == pl.num_programs(1) - 1)
    def _():
        cls = out.reshape(TB, S, H)[:, 0, :].astype(jnp.bfloat16)   # [TB, H]
        logits_ref[...] = (jnp.dot(cls, fcw_ref[...],
                                   preferred_element_type=jnp.float32)
                           + fcb_ref[...])


# ---------------------------------------------------------------------------
# pallas_call wrapper
# ---------------------------------------------------------------------------
def encoder_stack(emb, bias3, p, *, num_heads, batch_block=8):
    B, S, H = emb.shape
    L = p['wqkv'].shape[0]
    F = p['wi'].shape[-1]
    n_vec, wmax = p['layer_vec'].shape[1:]
    lpad = p['fc_w'].shape[1]
    TB = min(batch_block, B)
    assert B % TB == 0, "batch must be divisible by the batch block"

    def resident(arr):
        nd = arr.ndim
        return pl.BlockSpec(arr.shape, lambda b, l: (0,) * nd)

    def per_block(arr):                   # amortizes weight DMA over TB seqs
        return pl.BlockSpec((TB,) + arr.shape[1:],
                            lambda b, l: (b,) + (0,) * (arr.ndim - 1))

    def per_layer(arr):                   # layer-indexed -> prefetched weights
        return pl.BlockSpec((1,) + arr.shape[1:],
                            lambda b, l: (l,) + (0,) * (arr.ndim - 1))

    # Rough per-step VMEM budget (double-buffered per-layer weights + I/O +
    # in-flight activations) -> explicit limit for the v7x 64 MiB core.
    bf2, f4 = 2, 4
    wbytes = ((H * 3 * H + H * H + H * F + F * H) * bf2 + n_vec * wmax * f4) * 2
    act = (TB * S * H * f4 * 5            # x, h_state, ctx scratch, residuals
           + TB * num_heads * S * S * f4 * 2   # scores + probs (per sequence)
           + TB * S * F * f4                    # FFN intermediate
           + TB * S * 3 * H * f4)               # fused QKV
    io = 2 * (TB * S * H * f4 + TB * S * f4 + TB * lpad * f4)
    res = H * lpad * bf2 + (lpad + 2 * H) * f4
    vmem_bytes = int(min(max(wbytes + act + io + res + (4 << 20), 32 << 20),
                         96 << 20))

    kern = functools.partial(encoder_stack_kernel, num_heads=num_heads)
    return pl.pallas_call(
        kern,
        out_shape=jax.ShapeDtypeStruct((B, lpad), jnp.float32),
        grid=(B // TB, L),
        in_specs=[
            per_block(emb),                        # embeddings    [B, S, H]
            per_block(bias3),                      # mask bias     [B, 1, S]
            resident(p['emb_ln_g']), resident(p['emb_ln_b']),
            per_layer(p['wqkv']), per_layer(p['wo']),
            per_layer(p['wi']), per_layer(p['wf']),
            per_layer(p['layer_vec']),
            resident(p['fc_w']), resident(p['fc_b']),
        ],
        out_specs=pl.BlockSpec((TB, lpad), lambda b, l: (b, 0)),
        scratch_shapes=[pltpu.VMEM((TB * S, H), jnp.float32),   # hidden state
                        pltpu.VMEM((TB * S, H), jnp.float32)],  # attn context
        compiler_params=pltpu.CompilerParams(
            dimension_semantics=("parallel", "arbitrary"),
            vmem_limit_bytes=vmem_bytes),
    )(emb, bias3, p['emb_ln_g'], p['emb_ln_b'],
      p['wqkv'], p['wo'], p['wi'], p['wf'], p['layer_vec'],
      p['fc_w'], p['fc_b'])


# ---------------------------------------------------------------------------
# Full forward pass
# ---------------------------------------------------------------------------
def roberta_intent_classifier(params, input_ids, attention_mask,
                              *, num_heads, num_labels, batch_block=8):
    B, S = input_ids.shape

    # --- Embeddings (table gathers + position-id cumsum stay in JAX glue) ---
    token_mask = (input_ids != PAD_IDX).astype(jnp.int32)
    position_ids = jnp.cumsum(token_mask, axis=1) * token_mask + PAD_IDX
    emb = (params['word_emb'][input_ids]
           + params['pos_emb'][position_ids]
           + params['type_emb'][0]).astype(jnp.float32)          # [B, S, H]

    # Extended attention mask: 0 where attended, -1e9 where masked (f32).
    bias3 = ((1.0 - attention_mask.astype(jnp.float32)) * -1e9).reshape(B, 1, S)

    # Encoder + CLS pooling + classifier head, all inside one pallas_call.
    logits_pad = encoder_stack(emb, bias3, params, num_heads=num_heads,
                               batch_block=batch_block)
    return logits_pad[:, :num_labels]


# ---------------------------------------------------------------------------
# Deterministic synthetic parameter init (shapes per module __init__)
# ---------------------------------------------------------------------------
def init_params(key, *, vocab, max_pos, hidden, ff, num_layers, num_labels):
    std = 0.02
    keys = iter(jax.random.split(key, 16 + 8 * num_layers))

    def nrm(shape, dtype=jnp.float32):
        return (jax.random.normal(next(keys), shape, jnp.float32) * std).astype(dtype)

    L, H, F = num_layers, hidden, ff
    wmax = max(3 * H, F)

    # Matmul weights stored pre-transposed [in, out] and in bf16 (MXU operands);
    # Q/K/V fused along the output dim into a single per-layer weight.
    wq, wk, wv = nrm((L, H, H)), nrm((L, H, H)), nrm((L, H, H))
    wqkv = jnp.concatenate([wq, wk, wv], axis=-1).astype(jnp.bfloat16)

    # Packed per-layer vectors (biases zero, LN gains one) -> one DMA per layer.
    layer_vec = jnp.zeros((L, 8, wmax), jnp.float32)
    layer_vec = layer_vec.at[:, 2, :H].set(1.0)    # ln1 gamma
    layer_vec = layer_vec.at[:, 6, :H].set(1.0)    # ln2 gamma

    fc_core = nrm((H, num_labels))
    fc_w = jnp.zeros((H, LOGIT_PAD), jnp.float32).at[:, :num_labels].set(fc_core)

    return {
        'word_emb': nrm((vocab, H)),
        'pos_emb': nrm((max_pos, H)),
        'type_emb': nrm((1, H)),
        'emb_ln_g': jnp.ones((1, H), jnp.float32),
        'emb_ln_b': jnp.zeros((1, H), jnp.float32),
        'wqkv': wqkv,
        'wo': nrm((L, H, H), jnp.bfloat16),
        'wi': nrm((L, H, F), jnp.bfloat16),
        'wf': nrm((L, F, H), jnp.bfloat16),
        'layer_vec': layer_vec,
        # Classifier head, lane-padded to 128 outputs (sliced to num_labels).
        'fc_w': fc_w.astype(jnp.bfloat16),
        'fc_b': jnp.zeros((1, LOGIT_PAD), jnp.float32),
    }


if __name__ == "__main__":
    B, S, H, NH = 2, 8, 32, 4          # batch, seq, hidden, heads
    FF = 4 * H                         # intermediate size
    NUM_LAYERS = 2                     # small synthetic stand-in for 12
    VOCAB, MAX_POS = 100, 16
    NUM_LABELS = 4
    assert H % NH == 0

    key = jax.random.PRNGKey(0)
    pkey, ikey = jax.random.split(key)
    params = init_params(pkey, vocab=VOCAB, max_pos=MAX_POS, hidden=H,
                         ff=FF, num_layers=NUM_LAYERS, num_labels=NUM_LABELS)

    input_ids = jax.random.randint(ikey, (B, S), 2, VOCAB, dtype=jnp.int32)
    attention_mask = jnp.ones((B, S), jnp.int32)
    # Pad the tail of the second sequence to exercise the attention mask.
    attention_mask = attention_mask.at[1, 6:].set(0)
    input_ids = input_ids.at[1, 6:].set(PAD_IDX)

    logits = roberta_intent_classifier(params, input_ids, attention_mask,
                                       num_heads=NH, num_labels=NUM_LABELS,
                                       batch_block=8)
    logits = jax.block_until_ready(logits)
    assert logits.shape == (B, NUM_LABELS)
    assert bool(jnp.all(jnp.isfinite(logits)))
    print("KERNEL_OK")
</pallas_src>

<mosaic_0001>
module attributes {stable_mosaic.version = 11 : i64} {
  func.func @encoder_stack_kernel(%arg0: i32, %arg1: i32, %arg2: memref<2x8x32xf32, #tpu.memory_space<vmem>>, %arg3: memref<2x1x8xf32, #tpu.memory_space<vmem>>, %arg4: memref<1x32xf32, #tpu.memory_space<vmem>>, %arg5: memref<1x32xf32, #tpu.memory_space<vmem>>, %arg6: memref<1x32x96xbf16, #tpu.memory_space<vmem>>, %arg7: memref<1x32x32xbf16, #tpu.memory_space<vmem>>, %arg8: memref<1x32x128xbf16, #tpu.memory_space<vmem>>, %arg9: memref<1x128x32xbf16, #tpu.memory_space<vmem>>, %arg10: memref<1x8x128xf32, #tpu.memory_space<vmem>>, %arg11: memref<32x128xbf16, #tpu.memory_space<vmem>>, %arg12: memref<1x128xf32, #tpu.memory_space<vmem>>, %arg13: memref<2x128xf32, #tpu.memory_space<vmem>>, %arg14: memref<16x32xf32, #tpu.memory_space<vmem>>, %arg15: memref<16x32xf32, #tpu.memory_space<vmem>>) attributes {dimension_semantics = [#tpu.dimension_semantics<parallel>, #tpu.dimension_semantics<arbitrary>], iteration_bounds = array<i64: 1, 2>, scalar_prefetch = 0 : i64, scratch_operands = 2 : i64, tpu.core_type = #tpu.core_type<tc>, window_params = [{transform_indices = @transform_0, window_bounds = array<i64: 2, 8, 32>}, {transform_indices = @transform_1, window_bounds = array<i64: 2, 1, 8>}, {pipeline_mode = #tpu.pipeline_mode<synchronous>, transform_indices = @transform_2, window_bounds = array<i64: 1, 32>}, {pipeline_mode = #tpu.pipeline_mode<synchronous>, transform_indices = @transform_3, window_bounds = array<i64: 1, 32>}, {transform_indices = @transform_4, window_bounds = array<i64: 1, 32, 96>}, {transform_indices = @transform_5, window_bounds = array<i64: 1, 32, 32>}, {transform_indices = @transform_6, window_bounds = array<i64: 1, 32, 128>}, {transform_indices = @transform_7, window_bounds = array<i64: 1, 128, 32>}, {transform_indices = @transform_8, window_bounds = array<i64: 1, 8, 128>}, {pipeline_mode = #tpu.pipeline_mode<synchronous>, transform_indices = @transform_9, window_bounds = array<i64: 32, 128>}, {pipeline_mode = #tpu.pipeline_mode<synchronous>, transform_indices = @transform_10, window_bounds = array<i64: 1, 128>}, {transform_indices = @transform_11, window_bounds = array<i64: 2, 128>}]} {
    %c0_i32 = arith.constant 0 : i32
    %0 = arith.cmpi eq, %arg1, %c0_i32 : i32
    %1 = arith.extui %0 : i1 to i32
    %c0_i32_0 = arith.constant 0 : i32
    %2 = arith.cmpi ne, %1, %c0_i32_0 : i32
    scf.if %2 {
      %c0_57 = arith.constant 0 : index
      %c0_58 = arith.constant 0 : index
      %c0_59 = arith.constant 0 : index
      %175 = vector.load %arg2[%c0_57, %c0_58, %c0_59] : memref<2x8x32xf32, #tpu.memory_space<vmem>>, vector<2x8x32xf32>
      %176 = vector.shape_cast %175 : vector<2x8x32xf32> to vector<16x32xf32>
      %c0_60 = arith.constant 0 : index
      %c0_61 = arith.constant 0 : index
      %177 = vector.load %arg4[%c0_60, %c0_61] : memref<1x32xf32, #tpu.memory_space<vmem>>, vector<1x32xf32>
      %c0_62 = arith.constant 0 : index
      %c0_63 = arith.constant 0 : index
      %178 = vector.load %arg5[%c0_62, %c0_63] : memref<1x32xf32, #tpu.memory_space<vmem>>, vector<1x32xf32>
      %cst_64 = arith.constant dense<0.000000e+00> : vector<16xf32>
      %179 = vector.multi_reduction <add>, %176, %cst_64 [1] : vector<16x32xf32> to vector<16xf32>
      %180 = vector.shape_cast %179 : vector<16xf32> to vector<16x1xf32>
      %cst_65 = arith.constant 3.200000e+01 : f32
      %181 = vector.broadcast %cst_65 : f32 to vector<16x1xf32>
      %182 = arith.divf %180, %181 : vector<16x1xf32>
      %183 = vector.broadcast %182 : vector<16x1xf32> to vector<16x32xf32>
      %184 = arith.subf %176, %183 : vector<16x32xf32>
      %185 = arith.mulf %184, %184 : vector<16x32xf32>
      %cst_66 = arith.constant dense<0.000000e+00> : vector<16xf32>
      %186 = vector.multi_reduction <add>, %185, %cst_66 [1] : vector<16x32xf32> to vector<16xf32>
      %187 = vector.shape_cast %186 : vector<16xf32> to vector<16x1xf32>
      %cst_67 = arith.constant 3.200000e+01 : f32
      %188 = vector.broadcast %cst_67 : f32 to vector<16x1xf32>
      %189 = arith.divf %187, %188 : vector<16x1xf32>
      %190 = vector.broadcast %182 : vector<16x1xf32> to vector<16x32xf32>
      %191 = arith.subf %176, %190 : vector<16x32xf32>
      %cst_68 = arith.constant 9.99999974E-6 : f32
      %192 = vector.broadcast %cst_68 : f32 to vector<16x1xf32>
      %193 = arith.addf %189, %192 : vector<16x1xf32>
      %194 = math.rsqrt %193 : vector<16x1xf32>
      %195 = vector.broadcast %194 : vector<16x1xf32> to vector<16x32xf32>
      %196 = arith.mulf %191, %195 : vector<16x32xf32>
      %197 = vector.broadcast %177 : vector<1x32xf32> to vector<16x32xf32>
      %198 = arith.mulf %196, %197 : vector<16x32xf32>
      %199 = vector.broadcast %178 : vector<1x32xf32> to vector<16x32xf32>
      %200 = arith.addf %198, %199 : vector<16x32xf32>
      %c0_69 = arith.constant 0 : index
      %c0_70 = arith.constant 0 : index
      %201 = vector.load %arg14[%c0_69, %c0_70] : memref<16x32xf32, #tpu.memory_space<vmem>>, vector<16x32xf32>
      tpu.vector_store %arg14[%c0_69, %c0_70], %200 {strides = array<i32>} : memref<16x32xf32, #tpu.memory_space<vmem>>, vector<16x32xf32>,
    } else {
    }
    %c0 = arith.constant 0 : index
    %c0_1 = arith.constant 0 : index
    %3 = vector.load %arg14[%c0, %c0_1] : memref<16x32xf32, #tpu.memory_space<vmem>>, vector<16x32xf32>
    %4 = arith.truncf %3 : vector<16x32xf32> to vector<16x32xbf16>
    %c0_2 = arith.constant 0 : index
    %c0_3 = arith.constant 0 : index
    %c0_4 = arith.constant 0 : index
    %5 = vector.load %arg10[%c0_2, %c0_3, %c0_4] : memref<1x8x128xf32, #tpu.memory_space<vmem>>, vector<1x8x128xf32>
    %6 = vector.shape_cast %5 : vector<1x8x128xf32> to vector<8x128xf32>
    %7 = vector.extract_strided_slice %6 {offsets = [0, 0], sizes = [1, 96], strides = [1, 1]} : vector<8x128xf32> to vector<1x96xf32>
    %8 = vector.extract_strided_slice %6 {offsets = [1, 0], sizes = [1, 32], strides = [1, 1]} : vector<8x128xf32> to vector<1x32xf32>
    %9 = vector.extract_strided_slice %6 {offsets = [2, 0], sizes = [1, 32], strides = [1, 1]} : vector<8x128xf32> to vector<1x32xf32>
    %10 = vector.extract_strided_slice %6 {offsets = [3, 0], sizes = [1, 32], strides = [1, 1]} : vector<8x128xf32> to vector<1x32xf32>
    %11 = vector.extract_strided_slice %6 {offsets = [4, 0], sizes = [1, 128], strides = [1, 1]} : vector<8x128xf32> to vector<1x128xf32>
    %12 = vector.extract_strided_slice %6 {offsets = [5, 0], sizes = [1, 32], strides = [1, 1]} : vector<8x128xf32> to vector<1x32xf32>
    %13 = vector.extract_strided_slice %6 {offsets = [6, 0], sizes = [1, 32], strides = [1, 1]} : vector<8x128xf32> to vector<1x32xf32>
    %14 = vector.extract_strided_slice %6 {offsets = [7, 0], sizes = [1, 32], strides = [1, 1]} : vector<8x128xf32> to vector<1x32xf32>
    %c0_5 = arith.constant 0 : index
    %c0_6 = arith.constant 0 : index
    %c0_7 = arith.constant 0 : index
    %15 = vector.load %arg6[%c0_5, %c0_6, %c0_7] : memref<1x32x96xbf16, #tpu.memory_space<vmem>>, vector<1x32x96xbf16>
    %16 = vector.shape_cast %15 : vector<1x32x96xbf16> to vector<32x96xbf16>
    %cst = arith.constant dense<0.000000e+00> : vector<16x96xf32>
    %17 = tpu.matmul %4, %16, %cst {dimension_numbers = #tpu.dot_dimension_numbers<[1], [0], [0], [1], [0, 0, 1, 1], [], []>} : vector<16x32xbf16>, vector<32x96xbf16>, vector<16x96xf32> -> vector<16x96xf32>
    %18 = vector.broadcast %7 : vector<1x96xf32> to vector<16x96xf32>
    %19 = arith.addf %17, %18 : vector<16x96xf32>
    %20 = vector.extract_strided_slice %19 {offsets = [0, 0], sizes = [16, 32], strides = [1, 1]} : vector<16x96xf32> to vector<16x32xf32>
    %21 = vector.extract_strided_slice %19 {offsets = [0, 32], sizes = [16, 32], strides = [1, 1]} : vector<16x96xf32> to vector<16x32xf32>
    %22 = vector.extract_strided_slice %19 {offsets = [0, 64], sizes = [16, 32], strides = [1, 1]} : vector<16x96xf32> to vector<16x32xf32>
    %23 = vector.extract_strided_slice %20 {offsets = [0, 0], sizes = [8, 32], strides = [1, 1]} : vector<16x32xf32> to vector<8x32xf32>
    %24 = vector.shape_cast %23 : vector<8x32xf32> to vector<8x4x8xf32>
    %25 = tpu.transpose %24, [1, 0, 2] : vector<8x4x8xf32> -> vector<4x8x8xf32>
    %26 = arith.truncf %25 : vector<4x8x8xf32> to vector<4x8x8xbf16>
    %27 = vector.extract_strided_slice %21 {offsets = [0, 0], sizes = [8, 32], strides = [1, 1]} : vector<16x32xf32> to vector<8x32xf32>
    %28 = vector.shape_cast %27 : vector<8x32xf32> to vector<8x4x8xf32>
    %29 = tpu.transpose %28, [1, 0, 2] : vector<8x4x8xf32> -> vector<4x8x8xf32>
    %30 = arith.truncf %29 : vector<4x8x8xf32> to vector<4x8x8xbf16>
    %31 = vector.extract_strided_slice %22 {offsets = [0, 0], sizes = [8, 32], strides = [1, 1]} : vector<16x32xf32> to vector<8x32xf32>
    %32 = vector.shape_cast %31 : vector<8x32xf32> to vector<8x4x8xf32>
    %33 = tpu.transpose %32, [1, 0, 2] : vector<8x4x8xf32> -> vector<4x8x8xf32>
    %34 = arith.truncf %33 : vector<4x8x8xf32> to vector<4x8x8xbf16>
    "tpu.trace_start"() <{level = 10 : i32, message = "hqd,hkd->hqk"}> : () -> ()
    %cst_8 = arith.constant dense<0.000000e+00> : vector<4x8x8xf32>
    %35 = tpu.matmul %26, %30, %cst_8 {dimension_numbers = #tpu.dot_dimension_numbers<[2], [2], [1], [1], [0, 0, 0, 1, 1, 1], [0], [0]>} : vector<4x8x8xbf16>, vector<4x8x8xbf16>, vector<4x8x8xf32> -> vector<4x8x8xf32>
    "tpu.trace_stop"() : () -> ()
    %cst_9 = arith.constant 0.353553385 : f32
    %36 = vector.broadcast %cst_9 : f32 to vector<4x8x8xf32>
    %37 = arith.mulf %35, %36 : vector<4x8x8xf32>
    %c0_10 = arith.constant 0 : index
    %c0_11 = arith.constant 0 : index
    %c0_12 = arith.constant 0 : index
    %38 = vector.load %arg3[%c0_10, %c0_11, %c0_12] : memref<2x1x8xf32, #tpu.memory_space<vmem>>, vector<1x1x8xf32>
    %39 = vector.shape_cast %38 : vector<1x1x8xf32> to vector<1x8xf32>
    %40 = vector.shape_cast %39 : vector<1x8xf32> to vector<1x1x8xf32>
    %41 = vector.broadcast %40 : vector<1x1x8xf32> to vector<4x8x8xf32>
    %42 = arith.addf %37, %41 : vector<4x8x8xf32>
    %cst_13 = arith.constant dense<0xFF800000> : vector<4x8xf32>
    %43 = vector.multi_reduction <maximumf>, %42, %cst_13 [2] : vector<4x8x8xf32> to vector<4x8xf32>
    %44 = vector.shape_cast %43 : vector<4x8xf32> to vector<4x8x1xf32>
    %45 = vector.broadcast %44 : vector<4x8x1xf32> to vector<4x8x8xf32>
    %46 = arith.subf %42, %45 : vector<4x8x8xf32>
    %47 = math.exp %46 : vector<4x8x8xf32>
    %cst_14 = arith.constant dense<0.000000e+00> : vector<4x8xf32>
    %48 = vector.multi_reduction <add>, %47, %cst_14 [2] : vector<4x8x8xf32> to vector<4x8xf32>
    %49 = vector.shape_cast %48 : vector<4x8xf32> to vector<4x8x1xf32>
    %50 = tpu.reciprocal %49 {approx = true} : vector<4x8x1xf32> -> vector<4x8x1xf32>
    %51 = vector.broadcast %50 : vector<4x8x1xf32> to vector<4x8x8xf32>
    %52 = arith.mulf %47, %51 : vector<4x8x8xf32>
    %53 = arith.truncf %52 : vector<4x8x8xf32> to vector<4x8x8xbf16>
    "tpu.trace_start"() <{level = 10 : i32, message = "hqk,hkd->hqd"}> : () -> ()
    %cst_15 = arith.constant dense<0.000000e+00> : vector<4x8x8xf32>
    %54 = tpu.matmul %53, %34, %cst_15 {dimension_numbers = #tpu.dot_dimension_numbers<[2], [1], [1], [2], [0, 0, 0, 1, 1, 2], [0], [0]>} : vector<4x8x8xbf16>, vector<4x8x8xbf16>, vector<4x8x8xf32> -> vector<4x8x8xf32>
    "tpu.trace_stop"() : () -> ()
    %55 = tpu.transpose %54, [1, 0, 2] : vector<4x8x8xf32> -> vector<8x4x8xf32>
    %56 = vector.shape_cast %55 : vector<8x4x8xf32> to vector<8x32xf32>
    %c0_16 = arith.constant 0 : index
    %c0_17 = arith.constant 0 : index
    %57 = vector.load %arg15[%c0_16, %c0_17] : memref<16x32xf32, #tpu.memory_space<vmem>>, vector<8x32xf32>
    tpu.vector_store %arg15[%c0_16, %c0_17], %56 {strides = array<i32>} : memref<16x32xf32, #tpu.memory_space<vmem>>, vector<8x32xf32>,
    %58 = vector.extract_strided_slice %20 {offsets = [8, 0], sizes = [8, 32], strides = [1, 1]} : vector<16x32xf32> to vector<8x32xf32>
    %59 = vector.shape_cast %58 : vector<8x32xf32> to vector<8x4x8xf32>
    %60 = tpu.transpose %59, [1, 0, 2] : vector<8x4x8xf32> -> vector<4x8x8xf32>
    %61 = arith.truncf %60 : vector<4x8x8xf32> to vector<4x8x8xbf16>
    %62 = vector.extract_strided_slice %21 {offsets = [8, 0], sizes = [8, 32], strides = [1, 1]} : vector<16x32xf32> to vector<8x32xf32>
    %63 = vector.shape_cast %62 : vector<8x32xf32> to vector<8x4x8xf32>
    %64 = tpu.transpose %63, [1, 0, 2] : vector<8x4x8xf32> -> vector<4x8x8xf32>
    %65 = arith.truncf %64 : vector<4x8x8xf32> to vector<4x8x8xbf16>
    %66 = vector.extract_strided_slice %22 {offsets = [8, 0], sizes = [8, 32], strides = [1, 1]} : vector<16x32xf32> to vector<8x32xf32>
    %67 = vector.shape_cast %66 : vector<8x32xf32> to vector<8x4x8xf32>
    %68 = tpu.transpose %67, [1, 0, 2] : vector<8x4x8xf32> -> vector<4x8x8xf32>
    %69 = arith.truncf %68 : vector<4x8x8xf32> to vector<4x8x8xbf16>
    "tpu.trace_start"() <{level = 10 : i32, message = "hqd,hkd->hqk"}> : () -> ()
    %cst_18 = arith.constant dense<0.000000e+00> : vector<4x8x8xf32>
    %70 = tpu.matmul %61, %65, %cst_18 {dimension_numbers = #tpu.dot_dimension_numbers<[2], [2], [1], [1], [0, 0, 0, 1, 1, 1], [0], [0]>} : vector<4x8x8xbf16>, vector<4x8x8xbf16>, vector<4x8x8xf32> -> vector<4x8x8xf32>
    "tpu.trace_stop"() : () -> ()
    %cst_19 = arith.constant 0.353553385 : f32
    %71 = vector.broadcast %cst_19 : f32 to vector<4x8x8xf32>
    %72 = arith.mulf %70, %71 : vector<4x8x8xf32>
    %c1 = arith.constant 1 : index
    %c0_20 = arith.constant 0 : index
    %c0_21 = arith.constant 0 : index
    %73 = vector.load %arg3[%c1, %c0_20, %c0_21] : memref<2x1x8xf32, #tpu.memory_space<vmem>>, vector<1x1x8xf32>
    %74 = vector.shape_cast %73 : vector<1x1x8xf32> to vector<1x8xf32>
    %75 = vector.shape_cast %74 : vector<1x8xf32> to vector<1x1x8xf32>
    %76 = vector.broadcast %75 : vector<1x1x8xf32> to vector<4x8x8xf32>
    %77 = arith.addf %72, %76 : vector<4x8x8xf32>
    %cst_22 = arith.constant dense<0xFF800000> : vector<4x8xf32>
    %78 = vector.multi_reduction <maximumf>, %77, %cst_22 [2] : vector<4x8x8xf32> to vector<4x8xf32>
    %79 = vector.shape_cast %78 : vector<4x8xf32> to vector<4x8x1xf32>
    %80 = vector.broadcast %79 : vector<4x8x1xf32> to vector<4x8x8xf32>
    %81 = arith.subf %77, %80 : vector<4x8x8xf32>
    %82 = math.exp %81 : vector<4x8x8xf32>
    %cst_23 = arith.constant dense<0.000000e+00> : vector<4x8xf32>
    %83 = vector.multi_reduction <add>, %82, %cst_23 [2] : vector<4x8x8xf32> to vector<4x8xf32>
    %84 = vector.shape_cast %83 : vector<4x8xf32> to vector<4x8x1xf32>
    %85 = tpu.reciprocal %84 {approx = true} : vector<4x8x1xf32> -> vector<4x8x1xf32>
    %86 = vector.broadcast %85 : vector<4x8x1xf32> to vector<4x8x8xf32>
    %87 = arith.mulf %82, %86 : vector<4x8x8xf32>
    %88 = arith.truncf %87 : vector<4x8x8xf32> to vector<4x8x8xbf16>
    "tpu.trace_start"() <{level = 10 : i32, message = "hqk,hkd->hqd"}> : () -> ()
    %cst_24 = arith.constant dense<0.000000e+00> : vector<4x8x8xf32>
    %89 = tpu.matmul %88, %69, %cst_24 {dimension_numbers = #tpu.dot_dimension_numbers<[2], [1], [1], [2], [0, 0, 0, 1, 1, 2], [0], [0]>} : vector<4x8x8xbf16>, vector<4x8x8xbf16>, vector<4x8x8xf32> -> vector<4x8x8xf32>
    "tpu.trace_stop"() : () -> ()
    %90 = tpu.transpose %89, [1, 0, 2] : vector<4x8x8xf32> -> vector<8x4x8xf32>
    %91 = vector.shape_cast %90 : vector<8x4x8xf32> to vector<8x32xf32>
    %c8 = arith.constant 8 : index
    %c0_25 = arith.constant 0 : index
    %92 = vector.load %arg15[%c8, %c0_25] : memref<16x32xf32, #tpu.memory_space<vmem>>, vector<8x32xf32>
    tpu.vector_store %arg15[%c8, %c0_25], %91 {strides = array<i32>} : memref<16x32xf32, #tpu.memory_space<vmem>>, vector<8x32xf32>,
    %c0_26 = arith.constant 0 : index
    %c0_27 = arith.constant 0 : index
    %93 = vector.load %arg15[%c0_26, %c0_27] : memref<16x32xf32, #tpu.memory_space<vmem>>, vector<16x32xf32>
    %94 = arith.truncf %93 : vector<16x32xf32> to vector<16x32xbf16>
    %c0_28 = arith.constant 0 : index
    %c0_29 = arith.constant 0 : index
    %c0_30 = arith.constant 0 : index
    %95 = vector.load %arg7[%c0_28, %c0_29, %c0_30] : memref<1x32x32xbf16, #tpu.memory_space<vmem>>, vector<1x32x32xbf16>
    %96 = vector.shape_cast %95 : vector<1x32x32xbf16> to vector<32x32xbf16>
    %cst_31 = arith.constant dense<0.000000e+00> : vector<16x32xf32>
    %97 = tpu.matmul %94, %96, %cst_31 {dimension_numbers = #tpu.dot_dimension_numbers<[1], [0], [0], [1], [0, 0, 1, 1], [], []>} : vector<16x32xbf16>, vector<32x32xbf16>, vector<16x32xf32> -> vector<16x32xf32>
    %98 = vector.broadcast %8 : vector<1x32xf32> to vector<16x32xf32>
    %99 = arith.addf %97, %98 : vector<16x32xf32>
    %100 = arith.addf %3, %99 : vector<16x32xf32>
    %cst_32 = arith.constant dense<0.000000e+00> : vector<16xf32>
    %101 = vector.multi_reduction <add>, %100, %cst_32 [1] : vector<16x32xf32> to vector<16xf32>
    %102 = vector.shape_cast %101 : vector<16xf32> to vector<16x1xf32>
    %cst_33 = arith.constant 3.200000e+01 : f32
    %103 = vector.broadcast %cst_33 : f32 to vector<16x1xf32>
    %104 = arith.divf %102, %103 : vector<16x1xf32>
    %105 = vector.broadcast %104 : vector<16x1xf32> to vector<16x32xf32>
    %106 = arith.subf %100, %105 : vector<16x32xf32>
    %107 = arith.mulf %106, %106 : vector<16x32xf32>
    %cst_34 = arith.constant dense<0.000000e+00> : vector<16xf32>
    %108 = vector.multi_reduction <add>, %107, %cst_34 [1] : vector<16x32xf32> to vector<16xf32>
    %109 = vector.shape_cast %108 : vector<16xf32> to vector<16x1xf32>
    %cst_35 = arith.constant 3.200000e+01 : f32
    %110 = vector.broadcast %cst_35 : f32 to vector<16x1xf32>
    %111 = arith.divf %109, %110 : vector<16x1xf32>
    %112 = vector.broadcast %104 : vector<16x1xf32> to vector<16x32xf32>
    %113 = arith.subf %100, %112 : vector<16x32xf32>
    %cst_36 = arith.constant 9.99999974E-6 : f32
    %114 = vector.broadcast %cst_36 : f32 to vector<16x1xf32>
    %115 = arith.addf %111, %114 : vector<16x1xf32>
    %116 = math.rsqrt %115 : vector<16x1xf32>
    %117 = vector.broadcast %116 : vector<16x1xf32> to vector<16x32xf32>
    %118 = arith.mulf %113, %117 : vector<16x32xf32>
    %119 = vector.broadcast %9 : vector<1x32xf32> to vector<16x32xf32>
    %120 = arith.mulf %118, %119 : vector<16x32xf32>
    %121 = vector.broadcast %10 : vector<1x32xf32> to vector<16x32xf32>
    %122 = arith.addf %120, %121 : vector<16x32xf32>
    %123 = arith.truncf %122 : vector<16x32xf32> to vector<16x32xbf16>
    %c0_37 = arith.constant 0 : index
    %c0_38 = arith.constant 0 : index
    %c0_39 = arith.constant 0 : index
    %124 = vector.load %arg8[%c0_37, %c0_38, %c0_39] : memref<1x32x128xbf16, #tpu.memory_space<vmem>>, vector<1x32x128xbf16>
    %125 = vector.shape_cast %124 : vector<1x32x128xbf16> to vector<32x128xbf16>
    %cst_40 = arith.constant dense<0.000000e+00> : vector<16x128xf32>
    %126 = tpu.matmul %123, %125, %cst_40 {dimension_numbers = #tpu.dot_dimension_numbers<[1], [0], [0], [1], [0, 0, 1, 1], [], []>} : vector<16x32xbf16>, vector<32x128xbf16>, vector<16x128xf32> -> vector<16x128xf32>
    %127 = vector.broadcast %11 : vector<1x128xf32> to vector<16x128xf32>
    %128 = arith.addf %126, %127 : vector<16x128xf32>
    %129 = arith.mulf %128, %128 : vector<16x128xf32>
    %130 = arith.mulf %128, %129 : vector<16x128xf32>
    %cst_41 = arith.constant 4.471500e-02 : f32
    %131 = vector.broadcast %cst_41 : f32 to vector<16x128xf32>
    %132 = arith.mulf %131, %130 : vector<16x128xf32>
    %133 = arith.addf %128, %132 : vector<16x128xf32>
    %cst_42 = arith.constant 0.797884583 : f32
    %134 = vector.broadcast %cst_42 : f32 to vector<16x128xf32>
    %135 = arith.mulf %134, %133 : vector<16x128xf32>
    %136 = math.tanh %135 : vector<16x128xf32>
    %cst_43 = arith.constant 1.000000e+00 : f32
    %137 = vector.broadcast %cst_43 : f32 to vector<16x128xf32>
    %138 = arith.addf %137, %136 : vector<16x128xf32>
    %cst_44 = arith.constant 5.000000e-01 : f32
    %139 = vector.broadcast %cst_44 : f32 to vector<16x128xf32>
    %140 = arith.mulf %139, %138 : vector<16x128xf32>
    %141 = arith.mulf %128, %140 : vector<16x128xf32>
    %142 = arith.truncf %141 : vector<16x128xf32> to vector<16x128xbf16>
    %c0_45 = arith.constant 0 : index
    %c0_46 = arith.constant 0 : index
    %c0_47 = arith.constant 0 : index
    %143 = vector.load %arg9[%c0_45, %c0_46, %c0_47] : memref<1x128x32xbf16, #tpu.memory_space<vmem>>, vector<1x128x32xbf16>
    %144 = vector.shape_cast %143 : vector<1x128x32xbf16> to vector<128x32xbf16>
    %cst_48 = arith.constant dense<0.000000e+00> : vector<16x32xf32>
    %145 = tpu.matmul %142, %144, %cst_48 {dimension_numbers = #tpu.dot_dimension_numbers<[1], [0], [0], [1], [0, 0, 1, 1], [], []>} : vector<16x128xbf16>, vector<128x32xbf16>, vector<16x32xf32> -> vector<16x32xf32>
    %146 = vector.broadcast %12 : vector<1x32xf32> to vector<16x32xf32>
    %147 = arith.addf %145, %146 : vector<16x32xf32>
    %148 = arith.addf %122, %147 : vector<16x32xf32>
    %cst_49 = arith.constant dense<0.000000e+00> : vector<16xf32>
    %149 = vector.multi_reduction <add>, %148, %cst_49 [1] : vector<16x32xf32> to vector<16xf32>
    %150 = vector.shape_cast %149 : vector<16xf32> to vector<16x1xf32>
    %cst_50 = arith.constant 3.200000e+01 : f32
    %151 = vector.broadcast %cst_50 : f32 to vector<16x1xf32>
    %152 = arith.divf %150, %151 : vector<16x1xf32>
    %153 = vector.broadcast %152 : vector<16x1xf32> to vector<16x32xf32>
    %154 = arith.subf %148, %153 : vector<16x32xf32>
    %155 = arith.mulf %154, %154 : vector<16x32xf32>
    %cst_51 = arith.constant dense<0.000000e+00> : vector<16xf32>
    %156 = vector.multi_reduction <add>, %155, %cst_51 [1] : vector<16x32xf32> to vector<16xf32>
    %157 = vector.shape_cast %156 : vector<16xf32> to vector<16x1xf32>
    %cst_52 = arith.constant 3.200000e+01 : f32
    %158 = vector.broadcast %cst_52 : f32 to vector<16x1xf32>
    %159 = arith.divf %157, %158 : vector<16x1xf32>
    %160 = vector.broadcast %152 : vector<16x1xf32> to vector<16x32xf32>
    %161 = arith.subf %148, %160 : vector<16x32xf32>
    %cst_53 = arith.constant 9.99999974E-6 : f32
    %162 = vector.broadcast %cst_53 : f32 to vector<16x1xf32>
    %163 = arith.addf %159, %162 : vector<16x1xf32>
    %164 = math.rsqrt %163 : vector<16x1xf32>
    %165 = vector.broadcast %164 : vector<16x1xf32> to vector<16x32xf32>
    %166 = arith.mulf %161, %165 : vector<16x32xf32>
    %167 = vector.broadcast %13 : vector<1x32xf32> to vector<16x32xf32>
    %168 = arith.mulf %166, %167 : vector<16x32xf32>
    %169 = vector.broadcast %14 : vector<1x32xf32> to vector<16x32xf32>
    %170 = arith.addf %168, %169 : vector<16x32xf32>
    %c0_54 = arith.constant 0 : index
    %c0_55 = arith.constant 0 : index
    %171 = vector.load %arg14[%c0_54, %c0_55] : memref<16x32xf32, #tpu.memory_space<vmem>>, vector<16x32xf32>
    tpu.vector_store %arg14[%c0_54, %c0_55], %170 {strides = array<i32>} : memref<16x32xf32, #tpu.memory_space<vmem>>, vector<16x32xf32>,
    %c1_i32 = arith.constant 1 : i32
    %172 = arith.cmpi eq, %arg1, %c1_i32 : i32
    %173 = arith.extui %172 : i1 to i32
    %c0_i32_56 = arith.constant 0 : i32
    %174 = arith.cmpi ne, %173, %c0_i32_56 : i32
    scf.if %174 {
      %175 = vector.shape_cast %170 : vector<16x32xf32> to vector<2x8x32xf32>
      %176 = vector.extract_strided_slice %175 {offsets = [0, 0, 0], sizes = [2, 1, 32], strides = [1, 1, 1]} : vector<2x8x32xf32> to vector<2x1x32xf32>
      %177 = vector.shape_cast %176 : vector<2x1x32xf32> to vector<2x32xf32>
      %178 = arith.truncf %177 : vector<2x32xf32> to vector<2x32xbf16>
      %c0_57 = arith.constant 0 : index
      %c0_58 = arith.constant 0 : index
      %179 = vector.load %arg11[%c0_57, %c0_58] : memref<32x128xbf16, #tpu.memory_space<vmem>>, vector<32x128xbf16>
      %cst_59 = arith.constant dense<0.000000e+00> : vector<2x128xf32>
      %180 = tpu.matmul %178, %179, %cst_59 {dimension_numbers = #tpu.dot_dimension_numbers<[1], [0], [0], [1], [0, 0, 1, 1], [], []>} : vector<2x32xbf16>, vector<32x128xbf16>, vector<2x128xf32> -> vector<2x128xf32>
      %c0_60 = arith.constant 0 : index
      %c0_61 = arith.constant 0 : index
      %181 = vector.load %arg12[%c0_60, %c0_61] : memref<1x128xf32, #tpu.memory_space<vmem>>, vector<1x128xf32>
      %182 = vector.broadcast %181 : vector<1x128xf32> to vector<2x128xf32>
      %183 = arith.addf %180, %182 : vector<2x128xf32>
      %c0_62 = arith.constant 0 : index
      %c0_63 = arith.constant 0 : index
      %184 = vector.load %arg13[%c0_62, %c0_63] : memref<2x128xf32, #tpu.memory_space<vmem>>, vector<2x128xf32>
      tpu.vector_store %arg13[%c0_62, %c0_63], %183 {strides = array<i32>} : memref<2x128xf32, #tpu.memory_space<vmem>>, vector<2x128xf32>,
    } else {
    }
    return
  }
  func.func @transform_0(%arg0: i32, %arg1: i32) -> (i32, i32, i32) {
    %c0_i32 = arith.constant 0 : i32
    %c0_i32_0 = arith.constant 0 : i32
    %c0_i32_1 = arith.constant 0 : i32
    return %arg0, %c0_i32, %c0_i32_0 : i32, i32, i32
  }
  func.func @transform_1(%arg0: i32, %arg1: i32) -> (i32, i32, i32) {
    %c0_i32 = arith.constant 0 : i32
    %c0_i32_0 = arith.constant 0 : i32
    %c0_i32_1 = arith.constant 0 : i32
    return %arg0, %c0_i32, %c0_i32_0 : i32, i32, i32
  }
  func.func @transform_2(%arg0: i32, %arg1: i32) -> (i32, i32) {
    %c0_i32 = arith.constant 0 : i32
    %c0_i32_0 = arith.constant 0 : i32
    %c0_i32_1 = arith.constant 0 : i32
    return %c0_i32, %c0_i32_0 : i32, i32
  }
  func.func @transform_3(%arg0: i32, %arg1: i32) -> (i32, i32) {
    %c0_i32 = arith.constant 0 : i32
    %c0_i32_0 = arith.constant 0 : i32
    %c0_i32_1 = arith.constant 0 : i32
    return %c0_i32, %c0_i32_0 : i32, i32
  }
  func.func @transform_4(%arg0: i32, %arg1: i32) -> (i32, i32, i32) {
    %c0_i32 = arith.constant 0 : i32
    %c0_i32_0 = arith.constant 0 : i32
    %c0_i32_1 = arith.constant 0 : i32
    return %arg1, %c0_i32, %c0_i32_0 : i32, i32, i32
  }
  func.func @transform_5(%arg0: i32, %arg1: i32) -> (i32, i32, i32) {
    %c0_i32 = arith.constant 0 : i32
    %c0_i32_0 = arith.constant 0 : i32
    %c0_i32_1 = arith.constant 0 : i32
    return %arg1, %c0_i32, %c0_i32_0 : i32, i32, i32
  }
  func.func @transform_6(%arg0: i32, %arg1: i32) -> (i32, i32, i32) {
    %c0_i32 = arith.constant 0 : i32
    %c0_i32_0 = arith.constant 0 : i32
    %c0_i32_1 = arith.constant 0 : i32
    return %arg1, %c0_i32, %c0_i32_0 : i32, i32, i32
  }
  func.func @transform_7(%arg0: i32, %arg1: i32) -> (i32, i32, i32) {
    %c0_i32 = arith.constant 0 : i32
    %c0_i32_0 = arith.constant 0 : i32
    %c0_i32_1 = arith.constant 0 : i32
    return %arg1, %c0_i32, %c0_i32_0 : i32, i32, i32
  }
  func.func @transform_8(%arg0: i32, %arg1: i32) -> (i32, i32, i32) {
    %c0_i32 = arith.constant 0 : i32
    %c0_i32_0 = arith.constant 0 : i32
    %c0_i32_1 = arith.constant 0 : i32
    return %arg1, %c0_i32, %c0_i32_0 : i32, i32, i32
  }
  func.func @transform_9(%arg0: i32, %arg1: i32) -> (i32, i32) {
    %c0_i32 = arith.constant 0 : i32
    %c0_i32_0 = arith.constant 0 : i32
    %c0_i32_1 = arith.constant 0 : i32
    return %c0_i32, %c0_i32_0 : i32, i32
  }
  func.func @transform_10(%arg0: i32, %arg1: i32) -> (i32, i32) {
    %c0_i32 = arith.constant 0 : i32
    %c0_i32_0 = arith.constant 0 : i32
    %c0_i32_1 = arith.constant 0 : i32
    return %c0_i32, %c0_i32_0 : i32, i32
  }
  func.func @transform_11(%arg0: i32, %arg1: i32) -> (i32, i32) {
    %c0_i32 = arith.constant 0 : i32
    %c0_i32_0 = arith.constant 0 : i32
    return %arg0, %c0_i32 : i32, i32
  }
}

</mosaic_0001>

<bundles_post_ra>
// kernel: tpu_custom_call.1
= control target key start
LH: loop header
LB: loop body
LE: loop exit
PB: predicated region body
PF: predicated region fallthrough
CT: control target
= control target key end

     0   :  { %16 = vsyncpa [#allocation5], 0  ;;  %s2922_s17 = smov 0   ;;  %s2924_s18 = smov 0   ;;  %s3580_s0 = inlined_call_operand.vmem [shape: f32[2,8,32], index: 0, kind: input, shape index: {}]   ;;  %s3581_s1 = inlined_call_operand.vmem [shape: f32[2,1,8], index: 1, kind: input, shape index: {}]   ;;  %s3582_s2 = inlined_call_operand.vmem [shape: f32[1,32], index: 2, kind: input, shape index: {}]   ;;  %s3583_s3 = inlined_call_operand.vmem [shape: f32[1,32], index: 3, kind: input, shape index: {}]   ;;  %s3584_s4 = inlined_call_operand.vmem [shape: bf16[2,32,96], index: 4, kind: input, shape index: {}]   ;;  %s3585_s5 = inlined_call_operand.vmem [shape: bf16[2,32,32], index: 5, kind: input, shape index: {}]   ;;  %s3586_s6 = inlined_call_operand.vmem [shape: bf16[2,32,128], index: 6, kind: input, shape index: {}]   ;;  %s3587_s7 = inlined_call_operand.vmem [shape: bf16[2,128,32], index: 7, kind: input, shape index: {}]   ;;  %s3588_s8 = inlined_call_operand.vmem [shape: f32[2,8,128], index: 8, kind: input, shape index: {}]   ;;  %s3589_s9 = inlined_call_operand.vmem [shape: bf16[32,128], index: 9, kind: input, shape index: {}]   ;;  %s3590_s10 = inlined_call_operand.vmem [shape: f32[1,128], index: 10, kind: input, shape index: {}]   ;;  %s3591_s11 = inlined_call_operand.hbm [shape: f32[2,128], index: 11, kind: output, shape index: {}]  }
   0x1   :  { %s2926_s19 = smov 0  }
   0x2 LB: > { %3593 = sst [smem:[#allocation7_spill]] %s2843_s18  ;;  %s31_s21 = sadd.s32 1, %s2843_s18  ;;  %s2847_s19 = sphi %s2926_s19, %s22_s19   ;;  %s2843_s18 = sphi %s2924_s18, %s3597_s18   ;;  %s2839_s17 = sphi %s2922_s17, %s3596_s17  }
   0x3   : > { %p32_p0 = scmp.ge.s32.totalorder %s31_s21, 2  ;;  %p2529_p1 = scmp.ge.s32.totalorder %s2847_s19, 1 }
   0x4   : > { %p410_p2 = scmp.lt.s32.totalorder %s2847_s19, 3 }
   0x5   : > { %s3599_s21 = smov (%p32_p0, %s31_s21), 0 }
   0x6   : > { %3594 = sst [smem:[#allocation8_spill]] %s3599_s21  ;;  %p411_p3 = pnand %p2529_p1, %p410_p2 }
   0x7   : > { %p484_p4 = scmp.lt.s32.totalorder (!%p411_p3), %s2839_s17, 1  ;;  %p2539_p5 = scmp.ne.s32.totalorder (!%p411_p3), %s2839_s17, 0 }
   0x8   : > { %414 = sbr.rel (%p411_p3) target bundleno = 2961 (0xb91), region = 64 }
   0xd   : > { %s485_s22 = scalar_select %p484_p4, %s2839_s17, 1 }
   0xf   : > { %s2630_s23 = sshll.u32 %s485_s22, 4  ;;  %s2633_s24 = sshll.u32 %s485_s22, 6 }
  0x10   : > { %s2948_s27 = scalar_lea.vmem %s3584_s4, %s2630_s23  ;;  %s2953_s30 = scalar_lea.vmem %s3585_s5, %s2630_s23 }
  0x11   : > { %s2958_s14 = scalar_lea.vmem %s3586_s6, %s2630_s23  ;;  %s2963_s20 = scalar_lea.vmem %s3587_s7, %s2633_s24 }
  0x12   : > { %s2538_s21 = sshll.u32 %s485_s22, 3  ;;  %512 = sbr.rel (%p2539_p5) target bundleno = 301 (0x12d), region = 68 }
  0x13   : > { %s2968_s26 = scalar_lea.vmem %s3588_s8, %s2538_s21 }
  0x17   : > { %v513_v0 = vld [vmem:[%s3580_s0] sm:$0xff]  ;;  %vm517_vm0 = vcmask 261120   ;;  %v514_v2 = vld [vmem:[%s3580_s0 + $0x8] sm:$0xff]  ;;  %v2849_v4 = vmov 32.0  }
  0x18   : > { %v518_v1 = vsel %vm517_vm0, %v513_v0, 0.0  ;;  %v521_v3 = vsel %vm517_vm0, %v514_v2, 0.0  ;;  %2695 = vrcp.f32 %v2849_v4  ;;  %v2693_v35 = vld [vmem:[%s3582_s2] ss:$0 sm:$0xff] }
  0x19   : > { %519 = vadd.xlane.f32.xlu0 %v518_v1  ;;  %v2694_v38 = vld [vmem:[%s3583_s3] ss:$0 sm:$0xff] }
  0x1e   : > { %v2696_v5 = vpop.eup %2695 }
  0x1f   : > { %v525_v6 = vmul.f32 32.0, %v2696_v5  ;;  %vm529_vm1 = vweird.f32 %v2696_v5 }
  0x21   : > { %522 = vadd.xlane.f32.xlu0 %v521_v3  ;;  %v526_v7 = vsub.f32 1.0, %v525_v6 }
  0x23   : > { %v527_v8 = vmul.f32 %v2696_v5, %v526_v7 }
  0x25   : > { %v528_v9 = vadd.f32 %v2696_v5, %v527_v8 }
  0x27   : > { %v530_v10 = vsel %vm529_vm1, %v2696_v5, %v528_v9 }
  0x8c   : > { %v520_v11 = vpop.xlane.xlu0 %519 }
  0x8d   : > { %v531_v12 = vmul.f32 %v530_v10, %v520_v11 }
  0x8f   : > { %v533_v13 = vsub.f32 %v513_v0, %v531_v12 }
  0x91   : > { %v535_v14 = vmul.f32 %v533_v13, %v533_v13 }
  0x93   : > { %v537_v15 = vsel %vm517_vm0, %v535_v14, 0.0 }
  0x94   : > { %538 = vadd.xlane.f32.xlu1 %v537_v15  ;;  %v523_v16 = vpop.xlane.xlu0 %522 }
  0x95   : > { %v532_v17 = vmul.f32 %v530_v10, %v523_v16 }
  0x97   : > { %v534_v18 = vsub.f32 %v514_v2, %v532_v17 }
  0x99   : > { %v536_v19 = vmul.f32 %v534_v18, %v534_v18 }
  0x9b   : > { %v540_v20 = vsel %vm517_vm0, %v536_v19, 0.0 }
  0x9c   : > { %541 = vadd.xlane.f32.xlu1 %v540_v20 }
 0x107   : > { %v539_v21 = vpop.xlane.xlu1 %538 }
 0x108   : > { %v543_v22 = vmul.f32 %v539_v21, %v530_v10 }
 0x10a   : > { %v545_v23 = vadd.f32 1e-05, %v543_v22 }
 0x10c   : > { %2697 = vrsqrt.f32 %v545_v23  ;;  %vm553_vm3 = vweird.f32 %v545_v23 }
 0x10f   : > { %v542_v24 = vpop.xlane.xlu1 %541 }
 0x110   : > { %v544_v25 = vmul.f32 %v542_v24, %v530_v10 }
 0x112   : > { %v2698_v26 = vpop.eup %2697  ;;  %v546_v27 = vadd.f32 1e-05, %v544_v25 }
 0x113   : > { %v548_v28 = vmul.f32 %v2698_v26, %v545_v23  ;;  %vm554_vm2 = vweird.f32 %v2698_v26 }
 0x114   : > { %2699 = vrsqrt.f32 %v546_v27  ;;  %vm555_vm4 = vmor %vm553_vm3, %vm554_vm2  ;;  %vm563_vm6 = vweird.f32 %v546_v27 }
 0x115   : > { %v549_v29 = vmul.f32 %v2698_v26, %v548_v28 }
 0x117   : > { %v550_v30 = vmul.f32 0.5, %v549_v29 }
 0x119   : > { %v551_v31 = vsub.f32 1.5, %v550_v30 }
 0x11a   : > { %v2700_v32 = vpop.eup %2699 }
 0x11b   : > { %v552_v33 = vmul.f32 %v2698_v26, %v551_v31  ;;  %v558_v34 = vmul.f32 %v2700_v32, %v546_v27  ;;  %vm564_vm5 = vweird.f32 %v2700_v32 }
 0x11c   : > { %vm565_vm7 = vmor %vm563_vm6, %vm564_vm5 }
 0x11d   : > { %v556_v36 = vsel %vm555_vm4, %v2698_v26, %v552_v33  ;;  %v559_v37 = vmul.f32 %v2700_v32, %v558_v34 }
 0x11e   : > { %v567_v39 = vmul.f32 %v556_v36, %v533_v13 }
 0x11f   : > { %v560_v40 = vmul.f32 0.5, %v559_v37 }
 0x120   : > { %v572_v41 = vmul.f32 %v2693_v35, %v567_v39 }
 0x121   : > { %v561_v42 = vsub.f32 1.5, %v560_v40 }
 0x122   : > { %v577_v43 = vadd.f32 %v2694_v38, %v572_v41 }
 0x123   : > { %v562_v44 = vmul.f32 %v2700_v32, %v561_v42 }
 0x124   : > { %579 = vst.msk [vmem:[#allocation2] sm:$0xff] %vm517_vm0, %v577_v43 }
 0x125   : > { %v566_v45 = vsel %vm565_vm7, %v2700_v32, %v562_v44 }
 0x126   : > { %v568_v46 = vmul.f32 %v566_v45, %v534_v18 }
 0x128   : > { %v573_v47 = vmul.f32 %v2693_v35, %v568_v46 }
 0x12a   : > { %v578_v48 = vadd.f32 %v2694_v38, %v573_v47 }
 0x12c   : > { %580 = vst.msk [vmem:[#allocation2 + $0x8] sm:$0xff] %vm517_vm0, %v578_v48 }
 0x12d PF: > { %v2635_v49 = vld [vmem:[%s2948_s27 + $0x8] sm:$0xff]  ;;  %v2634_v50 = vld [vmem:[%s2948_s27] sm:$0xff]  ;;  %vm602_vm8 = vcmask 261120   ;;  %s2850_s13 = smov 104   ;;  %s2851_s15 = smov 120   ;;  %vm631_vm9 = vcmask 1047556  }
 0x12e   : > { %612 = vmatpush.bf16.msra.mxu0 %v2635_v49  ;;  %v581_v51 = vld [vmem:[#allocation2] sm:$0xff]  ;;  %s2852_s16 = smov 112   ;;  %s2853_s27 = smov 96   ;;  %v2855_v1 = vmov 1983009808   ;;  %vm997_vm10 = vcmask 64512  }
 0x12f   : > { %v584_v54 = vld [vmem:[%s2968_s26] sm:$0xff]  ;;  %s2854_s25 = smov 64   ;;  %v636_v2 = vunpack.c.l.s4 %v2855_v1  ;;  %v2856_v15 = vmov 1934713408   ;;  %vm1137_vm11 = vcmask 1043456   ;;  %s2857_s18 = smov 16  }
 0x130   : > { %v589_v55 = vperm.slane %v584_v54, 0  ;;  %v660_v16 = vunpack.c.l.s4 %v2856_v15  ;;  %s2858_s21 = smov 8   ;;  %s2859_s22 = smov 24   ;;  %vm1334_vm12 = vcmask 130048   ;;  %vm1336_vm13 = vcmask 195584  }
 0x131   : > { %v3005_v6 = vunpack.c.0.s8 %v636_v2  ;;  %p2616_p6 = scmp.ne.s32.totalorder %s2839_s17, 1 }
 0x132   : > { %613 = vmatpush.bf16.msra.mxu0 %v2634_v50  ;;  %v3015_v21 = vunpack.c.0.s8 %v660_v16 }
 0x133   : > { %v582_v52 = vld [vmem:[#allocation2 + $0x8] sm:$0xff] }
 0x134   : > { %v583_v53 = vpack.c.bf16 %v582_v52, %v581_v51 }
 0x136   : > { %2548 = vmatmul.msk.bf16.vlgmr.msra.gmra.mxu0 %vm602_vm8, %v583_v53 }
 0x1b3   : > { %v615_v56 = vpop.f32.mrf.mxu0 }
 0x1b4   : > { %v616_v57 = vadd.f32 %v615_v56, %v589_v55 }
 0x1b6   : > { %627 = vrot.lane.b32.xlu1 %v616_v57, %s2850_s13  ;;  %621 = vrot.lane.b32.xlu0 %v616_v57, %s2851_s15  ;;  %v633_v4 = vrot.slane %v616_v57, 4 }
 0x1bb   : > { %v617_v60 = vpop.f32.mrf.mxu0 }
 0x1bc   : > { %v2997_v63 = vadd.f32 %v617_v60, %v589_v55 }
 0x1be   : > { %624 = vrot.lane.b32.xlu0 %v616_v57, %s2852_s16 }
 0x228   : > { %v622_v58 = vpop.permute.xlu0 %621  ;;  %v628_v61 = vpop.permute.xlu1 %627 }
 0x229   : > { %v2993_v59 = vpack.i.bf16 %v622_v58, %v616_v57  ;;  %v645_v7 = vrot.slane %v622_v58, 4  ;;  %v643_v10 = vrot.slane %v628_v61, 4 }
 0x22b   : > { %2702 = vrot.lane.b32.xlu1 %v2993_v59, %s2853_s27  ;;  %v646_v12 = vsel %vm631_vm9, %v628_v61, %v645_v7  ;;  %v644_v14 = vsel %vm631_vm9, %v643_v10, %v622_v58 }
 0x22c   : > { %v654_v17 = vperm.slane %v646_v12, %v3005_v6  ;;  %v650_v19 = vperm.slane %v644_v14, %v3005_v6 }
 0x22e   : > { %v667_v24 = vrot.slane %v654_v17, 4  ;;  %v655_v26 = vrot.slane %v650_v19, 4 }
 0x230   : > { %v625_v62 = vpop.permute.xlu0 %624 }
 0x231   : > { %v2716_v0 = vpack.i.bf16 %v628_v61, %v625_v62  ;;  %v630_v3 = vrot.slane %v625_v62, 4  ;;  %v634_v5 = vsel %vm631_vm9, %v625_v62, %v633_v4 }
 0x232   : > { %v642_v9 = vperm.slane %v634_v5, %v3005_v6 }
 0x233   : > { %1340 = vrot.lane.b32.xlu1 %v2997_v63, %s2851_s15  ;;  %2717 = vrot.lane.b32.xlu0 %v2716_v0, %s2854_s25  ;;  %v632_v8 = vsel %vm631_vm9, %v630_v3, %v616_v57 }
 0x234   : > { %2707 = vrot.lane.b32.xlu2 %v2716_v0, %s2853_s27  ;;  %v638_v11 = vperm.slane %v632_v8, %v3005_v6  ;;  %v669_v13 = vrot.slane %v642_v9, 4  ;;  %v668_v27 = vsel %vm631_vm9, %v667_v24, %v642_v9 }
 0x235   : > { %v674_v30 = vperm.slane %v668_v27, %v3015_v21 }
 0x236   : > { %v657_v18 = vrot.slane %v638_v11, 4  ;;  %v670_v20 = vsel %vm631_vm9, %v654_v17, %v669_v13  ;;  %v656_v29 = vsel %vm631_vm9, %v655_v26, %v638_v11 }
 0x237   : > { %v678_v23 = vperm.slane %v670_v20, %v3015_v21  ;;  %v662_v32 = vperm.slane %v656_v29, %v3015_v21  ;;  %v683_v35 = vrot.slane %v674_v30, 4 }
 0x238   : > { %v658_v22 = vsel %vm631_vm9, %v650_v19, %v657_v18 }
 0x239   : > { %v666_v25 = vperm.slane %v658_v22, %v3015_v21  ;;  %v685_v28 = vrot.slane %v678_v23, 4  ;;  %v679_v38 = vrot.slane %v662_v32, 4  ;;  %v684_v42 = vsel %vm631_vm9, 0.0, %v683_v35 }
 0x23b   : > { %1343 = vrot.lane.b32.xlu1 %v2997_v63, %s2852_s16  ;;  %v681_v31 = vrot.slane %v666_v25, 4  ;;  %v686_v33 = vsel %vm631_vm9, 0.0, %v685_v28  ;;  %v698_v36 = vsel %vm631_vm9, %v685_v28, %v674_v30  ;;  %v680_v47 = vsel %vm631_vm9, 0.0, %v679_v38 }
 0x23c   : > { %v703_v37 = vrot.slane %v686_v33, 4  ;;  %v702_v43 = vperm.slane %v698_v36, %v3005_v6 }
 0x23d   : > { %v682_v34 = vsel %vm631_vm9, 0.0, %v681_v31  ;;  %v687_v40 = vsel %vm631_vm9, %v681_v31, %v662_v32  ;;  %v1351_v31 = vrot.slane %v2997_v63, 4 }
 0x23e   : > { %v692_v41 = vrot.slane %v682_v34, 4  ;;  %v704_v44 = vsel %vm631_vm9, %v703_v37, %v684_v42  ;;  %v691_v48 = vperm.slane %v687_v40, %v3005_v6  ;;  %v723_v52 = vrot.slane %v702_v43, 4 }
 0x23f   : > { %v708_v51 = vperm.slane %v704_v44, %v3005_v6 }
 0x240   : > { %v693_v49 = vsel %vm631_vm9, %v692_v41, %v680_v47  ;;  %v711_v58 = vrot.slane %v691_v48, 4 }
 0x241   : > { %v697_v57 = vperm.slane %v693_v49, %v3005_v6  ;;  %v724_v5 = vsel %vm631_vm9, %v708_v51, %v723_v52  ;;  %v721_v7 = vrot.slane %v708_v51, 4 }
 0x242   : > { %v732_v20 = vperm.slane %v724_v5, %v3015_v21 }
 0x243   : > { %1346 = vrot.lane.b32.xlu1 %v2997_v63, %s2850_s13  ;;  %v712_v12 = vsel %vm631_vm9, %v697_v57, %v711_v58  ;;  %v722_v22 = vsel %vm631_vm9, %v721_v7, %v702_v43  ;;  %v709_v26 = vrot.slane %v697_v57, 4 }
 0x244   : > { %v720_v25 = vperm.slane %v712_v12, %v3015_v21  ;;  %v3061_v32 = vperm.slane %v722_v22, %v3015_v21  ;;  %v737_v36 = vrot.slane %v732_v20, 4 }
 0x245   : > { %v710_v40 = vsel %vm631_vm9, %v709_v26, %v691_v48 }
 0x246   : > { %v3082_v57 = vperm.slane %v710_v40, %v3015_v21 }
 0x248   : > { %v735_v12 = vrot.slane %v3082_v57, 4 }
 0x28e   : > { %v2708_v39 = vpop.permute.xlu2 %2707 }
 0x28f   : > { %v2710_v45 = vunpack.i.h.bf16 %v2708_v39  ;;  %v2709_v46 = vunpack.i.l.bf16 %v2708_v39  ;;  %v739_v39 = vrot.slane %v720_v25, 4 }
 0x291   : > { %v769_v53 = vrot.slane %v2710_v45, 4  ;;  %v757_v54 = vrot.slane %v2709_v46, 4 }
 0x29d   : > { %v2703_v50 = vpop.permute.xlu1 %2702 }
 0x29e   : > { %v2705_v55 = vunpack.i.h.bf16 %v2703_v50  ;;  %v2704_v56 = vunpack.i.l.bf16 %v2703_v50 }
 0x2a0   : > { %v771_v60 = vrot.slane %v2705_v55, 4  ;;  %v758_v61 = vsel %vm631_vm9, %v757_v54, %v2704_v56  ;;  %v759_v62 = vrot.slane %v2704_v56, 4  ;;  %v770_v0 = vsel %vm631_vm9, %v769_v53, %v2705_v55 }
 0x2a1   : > { %v764_v1 = vperm.slane %v758_v61, %v3005_v6  ;;  %v776_v2 = vperm.slane %v770_v0, %v3005_v6 }
 0x2a2   : > { %v760_v3 = vsel %vm631_vm9, %v2709_v46, %v759_v62  ;;  %v772_v4 = vsel %vm631_vm9, %v2710_v45, %v771_v60 }
 0x2a3   : > { %v768_v8 = vperm.slane %v760_v3, %v3005_v6  ;;  %v780_v9 = vperm.slane %v772_v4, %v3005_v6  ;;  %v781_v10 = vrot.slane %v776_v2, 4  ;;  %v783_v11 = vrot.slane %v764_v1, 4 }
 0x2a4   : > { %v733_v3 = vrot.slane %v3061_v32, 4 }
 0x2a5   : > { %v782_v13 = vsel %vm631_vm9, %v781_v10, %v764_v1  ;;  %v784_v14 = vsel %vm631_vm9, %v776_v2, %v783_v11  ;;  %v793_v15 = vrot.slane %v780_v9, 4  ;;  %v795_v16 = vrot.slane %v768_v8, 4  ;;  %v3048_v17 = vpop.permute.xlu1 %1340 }
 0x2a6   : > { %v788_v18 = vperm.slane %v782_v13, %v3015_v21  ;;  %v792_v19 = vperm.slane %v784_v14, %v3015_v21  ;;  %v3090_v1 = vsel %vm631_vm9, %v732_v20, %v739_v39  ;;  %v3093_v2 = vsel %vm631_vm9, %v737_v36, %v720_v25 }
 0x2a7   : > { %v794_v23 = vsel %vm631_vm9, %v793_v15, %v768_v8  ;;  %v796_v24 = vsel %vm631_vm9, %v780_v9, %v795_v16  ;;  %v1363_v13 = vrot.slane %v3048_v17, 4 }
 0x2a8   : > { %v800_v27 = vperm.slane %v794_v23, %v3015_v21  ;;  %v804_v28 = vperm.slane %v796_v24, %v3015_v21  ;;  %v805_v29 = vrot.slane %v788_v18, 4  ;;  %v807_v30 = vrot.slane %v792_v19, 4 }
 0x2aa   : > { %v808_v33 = vsel %vm631_vm9, 0.0, %v807_v30  ;;  %v809_v34 = vrot.slane %v800_v27, 4  ;;  %v811_v35 = vrot.slane %v804_v28, 4  ;;  %v813_v37 = vsel %vm631_vm9, %v807_v30, %v788_v18 }
 0x2ab   : > { %v818_v38 = vrot.slane %v808_v33, 4  ;;  %v806_v41 = vsel %vm631_vm9, 0.0, %v805_v29  ;;  %v817_v43 = vperm.slane %v813_v37, %v3005_v6 }
 0x2ac   : > { %v812_v42 = vsel %vm631_vm9, 0.0, %v811_v35  ;;  %v824_v44 = vsel %vm631_vm9, %v811_v35, %v800_v27  ;;  %v810_v47 = vsel %vm631_vm9, 0.0, %v809_v34 }
 0x2ad   : > { %v829_v45 = vrot.slane %v812_v42, 4  ;;  %v3070_v46 = vpop.permute.xlu1 %1343  ;;  %v819_v49 = vsel %vm631_vm9, %v818_v38, %v806_v41  ;;  %v828_v50 = vperm.slane %v824_v44, %v3005_v6  ;;  %v837_v53 = vrot.slane %v817_v43, 4 }
 0x2ae   : > { %v1349_v51 = vrot.slane %v3070_v46, 4  ;;  %v1352_v48 = vsel %vm631_vm9, %v3070_v46, %v1351_v31  ;;  %v823_v52 = vperm.slane %v819_v49, %v3005_v6  ;;  %v736_v49 = vsel %vm631_vm9, %v3061_v32, %v735_v12 }
 0x2af   : > { %v1360_v54 = vperm.slane %v1352_v48, %v3005_v6  ;;  %v830_v55 = vsel %vm631_vm9, %v829_v45, %v810_v47  ;;  %v849_v56 = vrot.slane %v828_v50, 4 }
 0x2b0   : > { %v1350_v58 = vsel %vm631_vm9, %v1349_v51, %v2997_v63  ;;  %v834_v60 = vperm.slane %v830_v55, %v3005_v6  ;;  %v838_v61 = vsel %vm631_vm9, %v823_v52, %v837_v53  ;;  %v835_v62 = vrot.slane %v823_v52, 4 }
 0x2b1   : > { %v846_v0 = vperm.slane %v838_v61, %v3015_v21  ;;  %v1356_v4 = vperm.slane %v1350_v58, %v3005_v6  ;;  %v1387_v14 = vrot.slane %v1360_v54, 4  ;;  %v744_v55 = vpack.c.bf16 %v3090_v1, %v3090_v1 }
 0x2b2   : > { %v850_v5 = vsel %vm631_vm9, %v834_v60, %v849_v56  ;;  %v836_v7 = vsel %vm631_vm9, %v835_v62, %v817_v43  ;;  %v847_v8 = vrot.slane %v834_v60, 4 }
 0x2b3   : > { %v858_v9 = vperm.slane %v850_v5, %v3015_v21  ;;  %v865_v10 = vrot.slane %v846_v0, 4  ;;  %v842_v11 = vperm.slane %v836_v7, %v3015_v21  ;;  %v1375_v23 = vrot.slane %v1356_v4, 4 }
 0x2b4   : > { %v848_v15 = vsel %vm631_vm9, %v847_v8, %v828_v50 }
 0x2b5   : > { %v3104_v16 = vpop.permute.xlu1 %1346  ;;  %v866_v18 = vsel %vm631_vm9, %v858_v9, %v865_v10  ;;  %v854_v19 = vperm.slane %v848_v15, %v3015_v21  ;;  %v861_v20 = vrot.slane %v842_v11, 4  ;;  %v863_v22 = vrot.slane %v858_v9, 4 }
 0x2b6   : > { %v1361_v24 = vrot.slane %v3104_v16, 4  ;;  %v1364_v25 = vsel %vm631_vm9, %v3104_v16, %v1363_v13  ;;  %v870_v26 = vpack.c.bf16 %v866_v18, %v866_v18 }
 0x2b7   : > { %v1372_v27 = vperm.slane %v1364_v25, %v3005_v6  ;;  %v862_v28 = vsel %vm631_vm9, %v854_v19, %v861_v20  ;;  %v864_v29 = vsel %vm631_vm9, %v863_v22, %v846_v0  ;;  %v859_v30 = vrot.slane %v854_v19, 4 }
 0x2b8   : > { %v1362_v31 = vsel %vm631_vm9, %v1361_v24, %v3048_v17  ;;  %v1059_v33 = vsel %vm997_vm10, %v870_v26, 0  ;;  %v868_v34 = vpack.c.bf16 %v862_v28, %v862_v28  ;;  %v869_v35 = vpack.c.bf16 %v864_v29, %v864_v29 }
 0x2b9   : > { %v1368_v36 = vperm.slane %v1362_v31, %v3005_v6  ;;  %v1385_v37 = vrot.slane %v1372_v27, 4  ;;  %v1388_v38 = vsel %vm631_vm9, %v1372_v27, %v1387_v14  ;;  %1068 = vmatpush.bf16.xpose.msrb.mxu0 %v1059_v33  ;;  %v860_v39 = vsel %vm631_vm9, %v859_v30, %v842_v11 }
 0x2ba   : > { %v1396_v40 = vperm.slane %v1388_v38, %v3015_v21  ;;  %v1021_v41 = vsel %vm997_vm10, %v868_v34, 0  ;;  %v1040_v42 = vsel %vm997_vm10, %v869_v35, 0  ;;  %v867_v43 = vpack.c.bf16 %v860_v39, %v860_v39  ;;  %v2741_v39 = vld [vmem:[%s3581_s1] ss:$0 sm:$0xff] }
 0x2bb   : > { %v1373_v44 = vrot.slane %v1368_v36, 4  ;;  %v1376_v45 = vsel %vm631_vm9, %v1368_v36, %v1375_v23  ;;  %v1386_v47 = vsel %vm631_vm9, %v1385_v37, %v1360_v54  ;;  %1030 = vmatpush.bf16.xpose.msra.mxu2 %v1021_v41  ;;  %1049 = vmatpush.bf16.xpose.msra.mxu3 %v1040_v42  ;;  %v743_v54 = vpack.c.bf16 %v3093_v2, %v3093_v2 }
 0x2bc   : > { %v1384_v50 = vperm.slane %v1376_v45, %v3015_v21  ;;  %v1392_v51 = vperm.slane %v1386_v47, %v3015_v21  ;;  %v1403_v48 = vrot.slane %v1396_v40, 4  ;;  %v1002_v52 = vsel %vm997_vm10, %v867_v43, 0 }
 0x2bd   : > { %v1374_v53 = vsel %vm631_vm9, %v1373_v44, %v1356_v4  ;;  %1011 = vmatpush.bf16.xpose.msra.mxu1 %v1002_v52  ;;  %v742_v0 = vpack.c.bf16 %v736_v49, %v736_v49  ;;  %v734_v4 = vsel %vm631_vm9, %v733_v3, %v3082_v57 }
 0x2be   : > { %v1380_v56 = vperm.slane %v1374_v53, %v3015_v21  ;;  %v1399_v58 = vrot.slane %v1384_v50, 4  ;;  %v1401_v32 = vrot.slane %v1392_v51, 4  ;;  %v1404_v60 = vsel %vm631_vm9, 0.0, %v1403_v48 }
 0x2bf   : > { %v1416_v61 = vsel %vm631_vm9, %v1403_v48, %v1392_v51  ;;  %v1421_v62 = vrot.slane %v1404_v60, 4  ;;  %v741_v3 = vpack.c.bf16 %v734_v4, %v734_v4  ;;  %v2718_v4 = vpop.permute.xlu0 %2717 }
 0x2c0   : > { %v1397_v5 = vrot.slane %v1380_v56, 4  ;;  %v1400_v7 = vsel %vm631_vm9, 0.0, %v1399_v58  ;;  %v1402_v1 = vsel %vm631_vm9, 0.0, %v1401_v32  ;;  %v1405_v2 = vsel %vm631_vm9, %v1399_v58, %v1380_v56  ;;  %2552 = vmatmul.msk.bf16.vlgmr.msrb.gmra.mxu0 %vm997_vm10, %v744_v55 }
 0x2c1   : > { %v1410_v8 = vrot.slane %v1400_v7, 4  ;;  %v1420_v9 = vperm.slane %v1416_v61, %v3005_v6  ;;  %v1422_v10 = vsel %vm631_vm9, %v1421_v62, %v1402_v1  ;;  %v1409_v11 = vperm.slane %v1405_v2, %v3005_v6 }
 0x2c2   : > { %v1398_v12 = vsel %vm631_vm9, 0.0, %v1397_v5  ;;  %v1426_v57 = vperm.slane %v1422_v10, %v3005_v6  ;;  %2550 = vmatmul.msk.bf16.vlgmr.msra.gmra.mxu2 %vm997_vm10, %v742_v0  ;;  %2551 = vmatmul.msk.bf16.vlgmr.msra.gmra.mxu3 %vm997_vm10, %v743_v54  ;;  %v3183_v62 = vpack.i.bf16 %v3048_v17, %v2997_v63  ;;  %v3191_v0 = vpack.i.bf16 %v3104_v16, %v3070_v46 }
 0x2c3   : > { %v1411_v13 = vsel %vm631_vm9, %v1410_v8, %v1398_v12  ;;  %v1441_v14 = vrot.slane %v1420_v9, 4  ;;  %v1429_v15 = vrot.slane %v1409_v11, 4  ;;  %v2720_v12 = vunpack.i.h.bf16 %v2718_v4 }
 0x2c4   : > { %v1439_v18 = vrot.slane %v1426_v57, 4  ;;  %2549 = vmatmul.msk.bf16.vlgmr.msra.gmra.mxu1 %vm997_vm10, %v741_v3  ;;  %v1415_v19 = vperm.slane %v1411_v13, %v3005_v6 }
 0x2c5   : > { %v1442_v20 = vsel %vm631_vm9, %v1426_v57, %v1441_v14  ;;  %v2719_v57 = vunpack.i.l.bf16 %v2718_v4  ;;  %v895_v3 = vrot.slane %v2720_v12, 4 }
 0x2c6   : > { %v1427_v22 = vrot.slane %v1415_v19, 4  ;;  %v1440_v23 = vsel %vm631_vm9, %v1439_v18, %v1420_v9  ;;  %v1430_v24 = vsel %vm631_vm9, %v1415_v19, %v1429_v15  ;;  %v1450_v25 = vperm.slane %v1442_v20, %v3015_v21 }
 0x2c7   : > { %v1446_v26 = vperm.slane %v1440_v23, %v3015_v21  ;;  %v1438_v27 = vperm.slane %v1430_v24, %v3015_v21  ;;  %v883_v15 = vrot.slane %v2719_v57, 4 }
 0x2c8   : > { %v1428_v28 = vsel %vm631_vm9, %v1427_v22, %v1409_v11  ;;  %v1455_v29 = vrot.slane %v1450_v25, 4 }
 0x2c9   : > { %v1434_v30 = vperm.slane %v1428_v28, %v3015_v21  ;;  %v1451_v31 = vrot.slane %v1446_v26, 4  ;;  %v1457_v33 = vrot.slane %v1438_v27, 4 }
 0x2ca   : > { %v3163_v34 = vsel %vm631_vm9, %v1455_v29, %v1438_v27 }
 0x2cb   : > { %v3166_v35 = vsel %vm631_vm9, %v1451_v31, %v1434_v30  ;;  %v1453_v36 = vrot.slane %v1434_v30, 4  ;;  %v3169_v37 = vsel %vm631_vm9, %v1450_v25, %v1457_v33 }
 0x2cd   : > { %v3172_v38 = vsel %vm631_vm9, %v1446_v26, %v1453_v36 }
 0x33d   : > { %v1070_v40 = vpop.f32.mrf.mxu0 }
 0x33e   : > { %v1077_v41 = vmul.f32 0.35355338, %v1070_v40 }
 0x340   : > { %v1085_v42 = vadd.f32 %v2741_v39, %v1077_v41 }
 0x341   : > { %v1013_v43 = vpop.f32.mrf.mxu1 }
 0x342   : > { %v1074_v44 = vmul.f32 0.35355338, %v1013_v43  ;;  %v1095_v45 = vsel %vm997_vm10, %v1085_v42, -inf }
 0x343   : > { %1096 = vmax.xlane.f32.xlu2 %v1095_v45 }
 0x344   : > { %v1082_v47 = vadd.f32 %v2741_v39, %v1074_v44 }
 0x345   : > { %v1032_v49 = vpop.f32.mrf.mxu2  ;;  %v1051_v50 = vpop.f32.mrf.mxu3 }
 0x346   : > { %v1075_v51 = vmul.f32 0.35355338, %v1032_v49  ;;  %v1076_v48 = vmul.f32 0.35355338, %v1051_v50  ;;  %v1072_v52 = vpop.f32.mrf.mxu0  ;;  %v1086_v53 = vsel %vm997_vm10, %v1082_v47, -inf }
 0x347   : > { %1087 = vmax.xlane.f32.xlu1 %v1086_v53 }
 0x348   : > { %v1084_v55 = vadd.f32 %v2741_v39, %v1076_v48  ;;  %v1083_v54 = vadd.f32 %v2741_v39, %v1075_v51 }
 0x349   : > { %v1015_v56 = vpop.f32.mrf.mxu1 }
 0x34a   : > { %v1092_v58 = vsel %vm997_vm10, %v1084_v55, -inf  ;;  %v1089_v32 = vsel %vm997_vm10, %v1083_v54, -inf }
 0x34b   : > { %1093 = vmax.xlane.f32.xlu2 %v1092_v58  ;;  %1090 = vmax.xlane.f32.xlu0 %v1089_v32 }
 0x34d   : > { %v1034_v60 = vpop.f32.mrf.mxu2  ;;  %v1053_v61 = vpop.f32.mrf.mxu3 }
 0x35f   : > { %2722 = vrot.lane.b32.xlu0 %v3183_v62, %s2853_s27 }
 0x363   : > { %2712 = vrot.lane.b32.xlu2 %v2993_v59, %s2854_s25 }
 0x36b   : > { %2727 = vrot.lane.b32.xlu2 %v3191_v0, %s2853_s27 }
 0x3b6   : > { %v1097_v5 = vpop.xlane.xlu2 %1096 }
 0x3b7   : > { %v1101_v8 = vsub.f32 %v1085_v42, %v1097_v5 }
 0x3b9   : > { %v1108_v46 = vmul.f32 1.442695, %v1101_v8 }
 0x3ba   : > { %v1088_v7 = vpop.xlane.xlu1 %1087 }
 0x3bb   : > { %v1098_v1 = vsub.f32 %v1082_v47, %v1088_v7 }
 0x3bd   : > { %v1102_v2 = vmul.f32 1.442695, %v1098_v1 }
 0x3be   : > { %v1094_v63 = vpop.xlane.xlu2 %1093  ;;  %v1091_v17 = vpop.xlane.xlu0 %1090 }
 0x3bf   : > { %2743 = vpow2.f32 %v1102_v2  ;;  %v1100_v9 = vsub.f32 %v1084_v55, %v1094_v63  ;;  %v1099_v10 = vsub.f32 %v1083_v54, %v1091_v17 }
 0x3c1   : > { %v1106_v11 = vmul.f32 1.442695, %v1100_v9  ;;  %v1104_v59 = vmul.f32 1.442695, %v1099_v10 }
 0x3c3   : > { %2745 = vpow2.f32 %v1106_v11 }
 0x3c4   : > { %2747 = vpow2.f32 %v1104_v59 }
 0x3c5   : > { %v3195_v16 = vpop.eup %2743  ;;  %2749 = vpow2.f32 %v1108_v46 }
 0x3c6   : > { %v2713_v13 = vpop.permute.xlu2 %2712  ;;  %v1110_v14 = vsel %vm997_vm10, %v3195_v16, 0.0 }
 0x3c7   : > { %v2715_v18 = vunpack.i.h.bf16 %v2713_v13  ;;  %v2714_v19 = vunpack.i.l.bf16 %v2713_v13  ;;  %1111 = vadd.xlane.f32.xlu2 %v1110_v14 }
 0x3c9   : > { %v3199_v20 = vpop.eup %2745  ;;  %v896_v22 = vsel %vm631_vm9, %v895_v3, %v2715_v18  ;;  %v897_v23 = vrot.slane %v2715_v18, 4  ;;  %v884_v24 = vsel %vm631_vm9, %v883_v15, %v2714_v19  ;;  %v885_v25 = vrot.slane %v2714_v19, 4 }
 0x3ca   : > { %v3203_v26 = vpop.eup %2747  ;;  %v902_v27 = vperm.slane %v896_v22, %v3005_v6  ;;  %v890_v28 = vperm.slane %v884_v24, %v3005_v6  ;;  %v1116_v29 = vsel %vm997_vm10, %v3199_v20, 0.0 }
 0x3cb   : > { %v898_v30 = vsel %vm631_vm9, %v2720_v12, %v897_v23  ;;  %v886_v31 = vsel %vm631_vm9, %v2719_v57, %v885_v25  ;;  %v1113_v33 = vsel %vm997_vm10, %v3203_v26, 0.0  ;;  %1117 = vadd.xlane.f32.xlu1 %v1116_v29  ;;  %v3215_v42 = vpop.eup %2749 }
 0x3cc   : > { %v906_v36 = vperm.slane %v898_v30, %v3005_v6  ;;  %v907_v39 = vrot.slane %v902_v27, 4  ;;  %v894_v40 = vperm.slane %v886_v31, %v3005_v6  ;;  %v909_v41 = vrot.slane %v890_v28, 4  ;;  %1114 = vadd.xlane.f32.xlu0 %v1113_v33 }
 0x3cd   : > { %v1119_v54 = vsel %vm997_vm10, %v3215_v42, 0.0 }
 0x3ce   : > { %v919_v43 = vrot.slane %v906_v36, 4  ;;  %v908_v44 = vsel %vm631_vm9, %v907_v39, %v890_v28  ;;  %v910_v45 = vsel %vm631_vm9, %v902_v27, %v909_v41  ;;  %v921_v47 = vrot.slane %v894_v40, 4  ;;  %v2728_v49 = vpop.permute.xlu2 %2727 }
 0x3cf   : > { %v914_v50 = vperm.slane %v908_v44, %v3015_v21  ;;  %v918_v51 = vperm.slane %v910_v45, %v3015_v21  ;;  %v2730_v48 = vunpack.i.h.bf16 %v2728_v49  ;;  %v2729_v52 = vunpack.i.l.bf16 %v2728_v49 }
 0x3d0   : > { %v920_v53 = vsel %vm631_vm9, %v919_v43, %v894_v40  ;;  %v922_v55 = vsel %vm631_vm9, %v906_v36, %v921_v47 }
 0x3d1   : > { %v926_v56 = vperm.slane %v920_v53, %v3015_v21  ;;  %v930_v58 = vperm.slane %v922_v55, %v3015_v21  ;;  %v931_v32 = vrot.slane %v914_v50, 4  ;;  %v933_v60 = vrot.slane %v918_v51, 4  ;;  %v2723_v61 = vpop.permute.xlu0 %2722 }
 0x3d2   : > { %v1487_v4 = vrot.slane %v2730_v48, 4  ;;  %v1475_v5 = vrot.slane %v2729_v52, 4  ;;  %v2725_v7 = vunpack.i.h.bf16 %v2723_v61  ;;  %v2724_v1 = vunpack.i.l.bf16 %v2723_v61 }
 0x3d3   : > { %v932_v2 = vsel %vm631_vm9, 0.0, %v931_v32  ;;  %v934_v63 = vsel %vm631_vm9, 0.0, %v933_v60  ;;  %v935_v17 = vrot.slane %v926_v56, 4  ;;  %v937_v8 = vrot.slane %v930_v58, 4  ;;  %1120 = vadd.xlane.f32.xlu1 %v1119_v54 }
 0x3d4   : > { %v939_v9 = vsel %vm631_vm9, %v933_v60, %v914_v50  ;;  %v944_v10 = vrot.slane %v934_v63, 4  ;;  %v1488_v11 = vsel %vm631_vm9, %v1487_v4, %v2725_v7  ;;  %v1489_v59 = vrot.slane %v2725_v7, 4 }
 0x3d5   : > { %v936_v12 = vsel %vm631_vm9, 0.0, %v935_v17  ;;  %v938_v57 = vsel %vm631_vm9, 0.0, %v937_v8  ;;  %v943_v46 = vperm.slane %v939_v9, %v3005_v6  ;;  %v1494_v3 = vperm.slane %v1488_v11, %v3005_v6 }
 0x3d6   : > { %v955_v13 = vrot.slane %v938_v57, 4  ;;  %v1490_v14 = vsel %vm631_vm9, %v2730_v48, %v1489_v59  ;;  %v1476_v15 = vsel %vm631_vm9, %v1475_v5, %v2724_v1  ;;  %v1477_v18 = vrot.slane %v2724_v1, 4 }
 0x3d7   : > { %v1498_v19 = vperm.slane %v1490_v14, %v3005_v6  ;;  %v1499_v22 = vrot.slane %v1494_v3, 4  ;;  %v1482_v23 = vperm.slane %v1476_v15, %v3005_v6  ;;  %v945_v24 = vsel %vm631_vm9, %v944_v10, %v932_v2 }
 0x3d8   : > { %v1478_v25 = vsel %vm631_vm9, %v2729_v52, %v1477_v18  ;;  %v949_v27 = vperm.slane %v945_v24, %v3005_v6  ;;  %v950_v28 = vsel %vm631_vm9, %v937_v8, %v926_v56  ;;  %v956_v29 = vsel %vm631_vm9, %v955_v13, %v936_v12 }
 0x3d9   : > { %v1511_v30 = vrot.slane %v1498_v19, 4  ;;  %v1486_v31 = vperm.slane %v1478_v25, %v3005_v6  ;;  %v1500_v33 = vsel %vm631_vm9, %v1499_v22, %v1482_v23  ;;  %v1501_v36 = vrot.slane %v1482_v23, 4 }
 0x3da   : > { %v1506_v39 = vperm.slane %v1500_v33, %v3015_v21  ;;  %v954_v40 = vperm.slane %v950_v28, %v3005_v6  ;;  %v960_v41 = vperm.slane %v956_v29, %v3005_v6  ;;  %v963_v43 = vrot.slane %v943_v46, 4 }
 0x3db   : > { %v1502_v44 = vsel %vm631_vm9, %v1494_v3, %v1501_v36  ;;  %v1512_v45 = vsel %vm631_vm9, %v1511_v30, %v1486_v31  ;;  %v1513_v47 = vrot.slane %v1486_v31, 4  ;;  %v961_v49 = vrot.slane %v949_v27, 4 }
 0x3dc   : > { %v1510_v50 = vperm.slane %v1502_v44, %v3015_v21  ;;  %v1518_v51 = vperm.slane %v1512_v45, %v3015_v21  ;;  %v1523_v48 = vrot.slane %v1506_v39, 4  ;;  %v964_v52 = vsel %vm631_vm9, %v949_v27, %v963_v43 }
 0x3dd   : > { %v1514_v53 = vsel %vm631_vm9, %v1498_v19, %v1513_v47  ;;  %v972_v55 = vperm.slane %v964_v52, %v3015_v21  ;;  %v975_v54 = vrot.slane %v954_v40, 4  ;;  %v962_v56 = vsel %vm631_vm9, %v961_v49, %v943_v46 }
 0x3de   : > { %v1522_v58 = vperm.slane %v1514_v53, %v3015_v21  ;;  %v1524_v32 = vsel %vm631_vm9, 0.0, %v1523_v48  ;;  %v1525_v60 = vrot.slane %v1510_v50, 4  ;;  %v1527_v61 = vrot.slane %v1518_v51, 4 }
 0x3df   : > { %v976_v4 = vsel %vm631_vm9, %v960_v41, %v975_v54  ;;  %v991_v5 = vrot.slane %v972_v55, 4  ;;  %v968_v7 = vperm.slane %v962_v56, %v3015_v21  ;;  %v973_v1 = vrot.slane %v960_v41, 4 }
 0x3e0   : > { %v1526_v2 = vsel %vm631_vm9, 0.0, %v1525_v60  ;;  %v1528_v63 = vsel %vm631_vm9, 0.0, %v1527_v61  ;;  %v1529_v17 = vrot.slane %v1522_v58, 4  ;;  %v1531_v8 = vsel %vm631_vm9, %v1525_v60, %v1506_v39  ;;  %2732 = vrot.lane.b32.xlu0 %v3183_v62, %s2854_s25 }
 0x3e1   : > { %v1535_v9 = vperm.slane %v1531_v8, %v3005_v6  ;;  %v1536_v10 = vrot.slane %v1526_v2, 4  ;;  %v984_v11 = vperm.slane %v976_v4, %v3015_v21  ;;  %v974_v59 = vsel %vm631_vm9, %v973_v1, %v954_v40 }
 0x3e2   : > { %v1530_v12 = vsel %vm631_vm9, 0.0, %v1529_v17  ;;  %v980_v57 = vperm.slane %v974_v59, %v3015_v21  ;;  %v987_v46 = vrot.slane %v968_v7, 4  ;;  %v1542_v3 = vsel %vm631_vm9, %v1529_v17, %v1518_v51 }
 0x3e3   : > { %v1547_v13 = vrot.slane %v1530_v12, 4  ;;  %v992_v14 = vsel %vm631_vm9, %v984_v11, %v991_v5  ;;  %v989_v15 = vrot.slane %v984_v11, 4  ;;  %v1537_v62 = vsel %vm631_vm9, %v1536_v10, %v1524_v32 }
 0x3e4   : > { %v996_v18 = vpack.c.bf16 %v992_v14, %v992_v14  ;;  %v988_v19 = vsel %vm631_vm9, %v980_v57, %v987_v46  ;;  %v985_v22 = vrot.slane %v980_v57, 4  ;;  %v1541_v23 = vperm.slane %v1537_v62, %v3005_v6 }
 0x3e5   : > { %v994_v24 = vpack.c.bf16 %v988_v19, %v988_v19  ;;  %v990_v25 = vsel %vm631_vm9, %v989_v15, %v972_v55  ;;  %v1546_v27 = vperm.slane %v1542_v3, %v3005_v6  ;;  %v1548_v28 = vsel %vm631_vm9, %v1547_v13, %v1528_v63 }
 0x3e6   : > { %v1196_v29 = vsel %vm1137_vm11, %v996_v18, 0  ;;  %v995_v30 = vpack.c.bf16 %v990_v25, %v990_v25  ;;  %v986_v31 = vsel %vm631_vm9, %v985_v22, %v968_v7  ;;  %v1552_v33 = vperm.slane %v1548_v28, %v3005_v6 }
 0x3e7   : > { %1205 = vmatpush.bf16.msra.mxu0 %v1196_v29  ;;  %v1158_v36 = vsel %vm1137_vm11, %v994_v24, 0  ;;  %v993_v39 = vpack.c.bf16 %v986_v31, %v986_v31  ;;  %v1555_v40 = vrot.slane %v1535_v9, 4  ;;  %v1567_v41 = vrot.slane %v1546_v27, 4 }
 0x3e8   : > { %1167 = vmatpush.bf16.msrb.mxu2 %v1158_v36  ;;  %v1177_v43 = vsel %vm1137_vm11, %v995_v30, 0  ;;  %v1553_v44 = vrot.slane %v1541_v23, 4  ;;  %v1565_v45 = vrot.slane %v1552_v33, 4 }
 0x3e9   : > { %1186 = vmatpush.bf16.msrb.mxu3 %v1177_v43  ;;  %v1139_v47 = vsel %vm1137_vm11, %v993_v39, 0  ;;  %v1556_v49 = vsel %vm631_vm9, %v1541_v23, %v1555_v40  ;;  %v1568_v50 = vsel %vm631_vm9, %v1552_v33, %v1567_v41 }
 0x3ea   : > { %1148 = vmatpush.bf16.msrb.mxu1 %v1139_v47  ;;  %v1564_v51 = vperm.slane %v1556_v49, %v3015_v21  ;;  %v1576_v48 = vperm.slane %v1568_v50, %v3015_v21  ;;  %v1554_v52 = vsel %vm631_vm9, %v1553_v44, %v1535_v9  ;;  %v1566_v53 = vsel %vm631_vm9, %v1565_v45, %v1546_v27  ;;  %v3331_v49 = vld [vmem:[%s3581_s1 + $0x1] ss:$0 sm:$0xff] }
 0x3eb   : > { %v1560_v55 = vperm.slane %v1554_v52, %v3015_v21  ;;  %v1572_v54 = vperm.slane %v1566_v53, %v3015_v21  ;;  %v1460_v27 = vpack.c.bf16 %v3172_v38, %v3172_v38 }
 0x3ec   : > { %v1583_v56 = vrot.slane %v1564_v51, 4  ;;  %v1581_v58 = vrot.slane %v1576_v48, 4 }
 0x3ed   : > { %v1579_v32 = vrot.slane %v1560_v55, 4  ;;  %v1577_v60 = vrot.slane %v1572_v54, 4 }
 0x3ee   : > { %v1584_v61 = vsel %vm631_vm9, %v1576_v48, %v1583_v56  ;;  %v1582_v4 = vsel %vm631_vm9, %v1581_v58, %v1564_v51 }
 0x3ef   : > { %v1588_v5 = vpack.c.bf16 %v1584_v61, %v1584_v61  ;;  %v1580_v7 = vsel %vm631_vm9, %v1572_v54, %v1579_v32  ;;  %v1587_v1 = vpack.c.bf16 %v1582_v4, %v1582_v4  ;;  %v1578_v2 = vsel %vm631_vm9, %v1577_v60, %v1560_v55 }
 0x3f0   : > { %v1586_v63 = vpack.c.bf16 %v1580_v7, %v1580_v7  ;;  %v1585_v17 = vpack.c.bf16 %v1578_v2, %v1578_v2 }
 0x3f1   : > { %v1776_v8 = vsel %vm997_vm10, %v1588_v5, 0  ;;  %v1757_v9 = vsel %vm997_vm10, %v1587_v1, 0 }
 0x3f2   : > { %1785 = vmatpush.bf16.xpose.msrb.mxu0 %v1776_v8  ;;  %v1738_v10 = vsel %vm997_vm10, %v1586_v63, 0  ;;  %1766 = vmatpush.bf16.xpose.msra.mxu3 %v1757_v9  ;;  %v1719_v11 = vsel %vm997_vm10, %v1585_v17, 0 }
 0x3f3   : > { %1747 = vmatpush.bf16.xpose.msra.mxu2 %v1738_v10  ;;  %1728 = vmatpush.bf16.xpose.msra.mxu1 %v1719_v11 }
 0x43a   : > { %v1112_v59 = vpop.xlane.xlu2 %1111 }
 0x43b   : > { %2751 = vrcp.f32 %v1112_v59 }
 0x43e   : > { %v1118_v12 = vpop.xlane.xlu1 %1117 }
 0x43f   : > { %v1115_v57 = vpop.xlane.xlu0 %1114  ;;  %2753 = vrcp.f32 %v1118_v12 }
 0x440   : > { %2755 = vrcp.f32 %v1115_v57 }
 0x441   : > { %v2752_v46 = vpop.eup %2751 }
 0x442   : > { %v1126_v3 = vmul.f32 %v2752_v46, %v3195_v16 }
 0x444   : > { %v1130_v13 = vpack.c.bf16 %v1126_v3, %v1126_v3 }
 0x445   : > { %v2754_v14 = vpop.eup %2753 }
 0x446   : > { %v2756_v15 = vpop.eup %2755  ;;  %v1128_v62 = vmul.f32 %v2754_v14, %v3199_v20  ;;  %2553 = vmatmul.msk.bf16.vlgmr.msrb.gmra.mxu1 %vm997_vm10, %v1130_v13  ;;  %v1121_v18 = vpop.xlane.xlu1 %1120  ;;  %v1459_v20 = vpack.c.bf16 %v3166_v35, %v3166_v35 }
 0x447   : > { %v1127_v19 = vmul.f32 %v2756_v15, %v3203_v26  ;;  %2757 = vrcp.f32 %v1121_v18  ;;  %v1461_v26 = vpack.c.bf16 %v3163_v34, %v3163_v34 }
 0x448   : > { %v1132_v22 = vpack.c.bf16 %v1128_v62, %v1128_v62 }
 0x449   : > { %v1131_v23 = vpack.c.bf16 %v1127_v19, %v1127_v19 }
 0x44a   : > { %2555 = vmatmul.msk.bf16.vlgmr.msrb.gmra.mxu3 %vm997_vm10, %v1132_v22 }
 0x44b   : > { %2554 = vmatmul.msk.bf16.vlgmr.msrb.gmra.mxu2 %vm997_vm10, %v1131_v23 }
 0x44d   : > { %v2758_v24 = vpop.eup %2757 }
 0x44e   : > { %v1129_v16 = vmul.f32 %v2758_v24, %v3215_v42  ;;  %v1462_v42 = vpack.c.bf16 %v3169_v37, %v3169_v37 }
 0x450   : > { %v1133_v25 = vpack.c.bf16 %v1129_v16, %v1129_v16 }
 0x452   : > { %2556 = vmatmul.msk.bf16.vlgmr.msra.gmra.mxu0 %vm997_vm10, %v1133_v25 }
 0x456   : > { %2557 = vmatmul.msk.bf16.vlgmr.msra.gmra.mxu1 %vm997_vm10, %v1459_v20 }
 0x45a   : > { %2559 = vmatmul.msk.bf16.vlgmr.msra.gmra.mxu3 %vm997_vm10, %v1461_v26 }
 0x45b   : > { %2558 = vmatmul.msk.bf16.vlgmr.msra.gmra.mxu2 %vm997_vm10, %v1460_v27 }
 0x462   : > { %2560 = vmatmul.msk.bf16.vlgmr.msrb.gmra.mxu0 %vm997_vm10, %v1462_v42 }
 0x4c3   : > { %v1150_v28 = vpop.f32.mrf.mxu1 }
 0x4c4   : > { %v1213_v35 = vrot.slane %v1150_v28, 4 }
 0x4cb   : > { %v1152_v29 = vpop.f32.mrf.mxu1 }
 0x4cd   : > { %v1188_v30 = vpop.f32.mrf.mxu3 }
 0x4ce   : > { %v1169_v31 = vpop.f32.mrf.mxu2  ;;  %v1211_v33 = vrot.slane %v1188_v30, 4  ;;  %v1214_v34 = vsel %vm631_vm9, %v1188_v30, %v1213_v35 }
 0x4cf   : > { %v1225_v36 = vrot.slane %v1169_v31, 4  ;;  %v1222_v38 = vperm.slane %v1214_v34, %v3005_v6  ;;  %v1207_v39 = vpop.f32.mrf.mxu0 }
 0x4d0   : > { %v1212_v40 = vsel %vm631_vm9, %v1211_v33, %v1150_v28  ;;  %v1223_v41 = vrot.slane %v1207_v39, 4 }
 0x4d1   : > { %v1218_v43 = vperm.slane %v1212_v40, %v3005_v6  ;;  %v1249_v37 = vrot.slane %v1222_v38, 4  ;;  %v1226_v44 = vsel %vm631_vm9, %v1207_v39, %v1225_v36 }
 0x4d2   : > { %v1224_v45 = vsel %vm631_vm9, %v1223_v41, %v1169_v31  ;;  %v1234_v47 = vperm.slane %v1226_v44, %v3005_v6 }
 0x4d3   : > { %v1237_v50 = vrot.slane %v1218_v43, 4  ;;  %v1230_v51 = vperm.slane %v1224_v45, %v3005_v6  ;;  %v1730_v48 = vpop.f32.mrf.mxu1 }
 0x4d4   : > { %v1247_v52 = vrot.slane %v1234_v47, 4  ;;  %v1250_v53 = vsel %vm631_vm9, %v1234_v47, %v1249_v37  ;;  %v1791_v55 = vmul.f32 0.35355338, %v1730_v48 }
 0x4d5   : > { %v1235_v54 = vrot.slane %v1230_v51, 4  ;;  %v1238_v56 = vsel %vm631_vm9, %v1230_v51, %v1237_v50  ;;  %v1258_v58 = vperm.slane %v1250_v53, %v3015_v21  ;;  %v1190_v32 = vpop.f32.mrf.mxu3 }
 0x4d6   : > { %v1246_v60 = vperm.slane %v1238_v56, %v3015_v21  ;;  %v1248_v61 = vsel %vm631_vm9, %v1247_v52, %v1222_v38  ;;  %v1171_v4 = vpop.f32.mrf.mxu2  ;;  %v3340_v5 = vadd.f32 %v3331_v49, %v1791_v55 }
 0x4d7   : > { %v1236_v7 = vsel %vm631_vm9, %v1235_v54, %v1218_v43  ;;  %v1254_v1 = vperm.slane %v1248_v61, %v3015_v21  ;;  %v1265_v2 = vrot.slane %v1258_v58, 4  ;;  %v1209_v63 = vpop.f32.mrf.mxu0 }
 0x4d8   : > { %v1242_v17 = vperm.slane %v1236_v7, %v3015_v21  ;;  %v1261_v8 = vrot.slane %v1246_v60, 4  ;;  %v1804_v9 = vsel %vm997_vm10, %v3340_v5, -inf }
 0x4d9   : > { %v1263_v10 = vrot.slane %v1254_v1, 4  ;;  %v1266_v11 = vsel %vm631_vm9, 0.0, %v1265_v2  ;;  %v1278_v59 = vsel %vm631_vm9, %v1265_v2, %v1254_v1  ;;  %1805 = vmax.xlane.f32.xlu1 %v1804_v9 }
 0x4da   : > { %v1259_v12 = vrot.slane %v1242_v17, 4  ;;  %v1262_v57 = vsel %vm631_vm9, 0.0, %v1261_v8  ;;  %v1282_v46 = vperm.slane %v1278_v59, %v3005_v6  ;;  %v1283_v3 = vrot.slane %v1266_v11, 4 }
 0x4db   : > { %v1264_v13 = vsel %vm631_vm9, 0.0, %v1263_v10  ;;  %v1272_v14 = vrot.slane %v1262_v57, 4  ;;  %v1732_v15 = vpop.f32.mrf.mxu1  ;;  %v1267_v62 = vsel %vm631_vm9, %v1261_v8, %v1242_v17 }
 0x4dc   : > { %v1260_v18 = vsel %vm631_vm9, 0.0, %v1259_v12  ;;  %v1271_v19 = vperm.slane %v1267_v62, %v3005_v6  ;;  %v1284_v22 = vsel %vm631_vm9, %v1283_v3, %v1264_v13  ;;  %v1303_v23 = vrot.slane %v1282_v46, 4  ;;  %v2733_v62 = vpop.permute.xlu0 %2732 }
 0x4dd   : > { %v1768_v24 = vpop.f32.mrf.mxu3  ;;  %v1273_v16 = vsel %vm631_vm9, %v1272_v14, %v1260_v18  ;;  %v1288_v25 = vperm.slane %v1284_v22, %v3005_v6  ;;  %v2735_v18 = vunpack.i.h.bf16 %v2733_v62 }
 0x4de   : > { %v1749_v20 = vpop.f32.mrf.mxu2  ;;  %v1277_v26 = vperm.slane %v1273_v16, %v3005_v6  ;;  %v1291_v27 = vrot.slane %v1271_v19, 4  ;;  %v1793_v43 = vmul.f32 0.35355338, %v1768_v24 }
 0x4df   : > { %v1787_v42 = vpop.f32.mrf.mxu0  ;;  %v1301_v28 = vrot.slane %v1288_v25, 4  ;;  %v1304_v30 = vsel %vm631_vm9, %v1288_v25, %v1303_v23  ;;  %v1792_v56 = vmul.f32 0.35355338, %v1749_v20  ;;  %v1615_v23 = vrot.slane %v2735_v18, 4 }
 0x4e0   : > { %v1794_v29 = vmul.f32 0.35355338, %v1787_v42  ;;  %v1292_v35 = vsel %vm631_vm9, %v1277_v26, %v1291_v27  ;;  %v1289_v33 = vrot.slane %v1277_v26, 4  ;;  %v1312_v39 = vperm.slane %v1304_v30, %v3015_v21 }
 0x4e1   : > { %v1300_v31 = vperm.slane %v1292_v35, %v3015_v21  ;;  %v1302_v34 = vsel %vm631_vm9, %v1301_v28, %v1282_v46  ;;  %v1802_v55 = vadd.f32 %v3331_v49, %v1793_v43  ;;  %v1801_v32 = vadd.f32 %v3331_v49, %v1792_v56 }
 0x4e2   : > { %v1803_v36 = vadd.f32 %v3331_v49, %v1794_v29  ;;  %v1308_v38 = vperm.slane %v1302_v34, %v3015_v21  ;;  %v1290_v40 = vsel %vm631_vm9, %v1289_v33, %v1271_v19  ;;  %v1317_v61 = vrot.slane %v1312_v39, 4 }
 0x4e3   : > { %v1319_v41 = vrot.slane %v1300_v31, 4  ;;  %v1296_v44 = vperm.slane %v1290_v40, %v3015_v21  ;;  %v1810_v58 = vsel %vm997_vm10, %v1802_v55, -inf  ;;  %v1807_v60 = vsel %vm997_vm10, %v1801_v32, -inf }
 0x4e4   : > { %v1813_v37 = vsel %vm997_vm10, %v1803_v36, -inf  ;;  %v1313_v45 = vrot.slane %v1308_v38, 4  ;;  %v1318_v4 = vsel %vm631_vm9, %v1317_v61, %v1300_v31  ;;  %v2734_v19 = vunpack.i.l.bf16 %v2733_v62 }
 0x4e5   : > { %v1770_v47 = vpop.f32.mrf.mxu3  ;;  %1814 = vmax.xlane.f32.xlu1 %v1813_v37  ;;  %v3370_v50 = vsel %vm631_vm9, %v1312_v39, %v1319_v41  ;;  %v1315_v48 = vrot.slane %v1296_v44, 4 }
 0x4e6   : > { %v1751_v51 = vpop.f32.mrf.mxu2  ;;  %v3373_v52 = vsel %vm631_vm9, %v1313_v45, %v1296_v44  ;;  %v1603_v24 = vrot.slane %v2734_v19, 4 }
 0x4e7   : > { %v1789_v53 = vpop.f32.mrf.mxu0  ;;  %v3377_v54 = vsel %vm631_vm9, %v1308_v38, %v1315_v48 }
 0x4ed   : > { %1811 = vmax.xlane.f32.xlu1 %v1810_v58 }
 0x4f5   : > { %1808 = vmax.xlane.f32.xlu1 %v1807_v60 }
 0x50e   : > { %2737 = vrot.lane.b32.xlu1 %v3191_v0, %s2854_s25 }
 0x516   : > { %1326 = vrot.lane.b32.xlu1 %v1318_v4, %s2857_s18 }
 0x54c   : > { %v1806_v7 = vpop.xlane.xlu1 %1805 }
 0x54d   : > { %v1816_v12 = vsub.f32 %v3340_v5, %v1806_v7 }
 0x54f   : > { %v1820_v3 = vmul.f32 1.442695, %v1816_v12 }
 0x558   : > { %v1815_v1 = vpop.xlane.xlu1 %1814 }
 0x559   : > { %v1819_v2 = vsub.f32 %v1803_v36, %v1815_v1 }
 0x55b   : > { %v1826_v63 = vmul.f32 1.442695, %v1819_v2 }
 0x55d   : > { %2759 = vpow2.f32 %v1826_v63 }
 0x560   : > { %v1812_v17 = vpop.xlane.xlu1 %1811 }
 0x561   : > { %v1818_v8 = vsub.f32 %v1802_v55, %v1812_v17 }
 0x563   : > { %v3386_v49 = vpop.eup %2759  ;;  %v1824_v9 = vmul.f32 1.442695, %v1818_v8 }
 0x564   : > { %v1837_v10 = vsel %vm997_vm10, %v3386_v49, 0.0 }
 0x565   : > { %2761 = vpow2.f32 %v1824_v9  ;;  %1838 = vadd.xlane.f32.xlu0 %v1837_v10 }
 0x568   : > { %v1809_v0 = vpop.xlane.xlu1 %1808 }
 0x569   : > { %v1817_v11 = vsub.f32 %v1801_v32, %v1809_v0 }
 0x56b   : > { %v3390_v59 = vpop.eup %2761  ;;  %v1822_v57 = vmul.f32 1.442695, %v1817_v11 }
 0x56c   : > { %v1834_v46 = vsel %vm997_vm10, %v3390_v59, 0.0 }
 0x56d   : > { %2763 = vpow2.f32 %v1822_v57  ;;  %1835 = vadd.xlane.f32.xlu2 %v1834_v46 }
 0x56e   : > { %2765 = vpow2.f32 %v1820_v3 }
 0x573   : > { %v3395_v13 = vpop.eup %2763 }
 0x574   : > { %v1831_v14 = vsel %vm997_vm10, %v3395_v13, 0.0  ;;  %v3399_v15 = vpop.eup %2765 }
 0x575   : > { %1832 = vadd.xlane.f32.xlu2 %v1831_v14  ;;  %v1828_v5 = vsel %vm997_vm10, %v3399_v15, 0.0 }
 0x57d   : > { %1829 = vadd.xlane.f32.xlu2 %v1828_v5 }
 0x580   : > { %v2738_v22 = vpop.permute.xlu1 %2737 }
 0x581   : > { %v2740_v16 = vunpack.i.h.bf16 %v2738_v22  ;;  %v2739_v25 = vunpack.i.l.bf16 %v2738_v22 }
 0x583   : > { %v1613_v20 = vrot.slane %v2740_v16, 4  ;;  %v1616_v26 = vsel %vm631_vm9, %v2740_v16, %v1615_v23  ;;  %v1601_v27 = vrot.slane %v2739_v25, 4  ;;  %v1604_v42 = vsel %vm631_vm9, %v2739_v25, %v1603_v24 }
 0x584   : > { %v1624_v28 = vperm.slane %v1616_v26, %v3005_v6  ;;  %v1612_v29 = vperm.slane %v1604_v42, %v3005_v6 }
 0x585   : > { %v1614_v35 = vsel %vm631_vm9, %v1613_v20, %v2735_v18  ;;  %v1602_v30 = vsel %vm631_vm9, %v1601_v27, %v2734_v19 }
 0x586   : > { %v1620_v31 = vperm.slane %v1614_v35, %v3005_v6  ;;  %v1637_v33 = vrot.slane %v1624_v28, 4  ;;  %v1608_v34 = vperm.slane %v1602_v30, %v3005_v6  ;;  %v1639_v36 = vrot.slane %v1612_v29, 4 }
 0x588   : > { %v1625_v38 = vrot.slane %v1620_v31, 4  ;;  %v1627_v39 = vrot.slane %v1608_v34, 4  ;;  %v1638_v40 = vsel %vm631_vm9, %v1637_v33, %v1612_v29  ;;  %v1640_v41 = vsel %vm631_vm9, %v1624_v28, %v1639_v36 }
 0x589   : > { %v1644_v43 = vperm.slane %v1638_v40, %v3015_v21  ;;  %v1648_v37 = vperm.slane %v1640_v41, %v3015_v21 }
 0x58a   : > { %v1626_v44 = vsel %vm631_vm9, %v1625_v38, %v1608_v34  ;;  %v1628_v45 = vsel %vm631_vm9, %v1620_v31, %v1627_v39 }
 0x58b   : > { %v1632_v47 = vperm.slane %v1626_v44, %v3015_v21  ;;  %v1636_v51 = vperm.slane %v1628_v45, %v3015_v21  ;;  %v1653_v48 = vrot.slane %v1644_v43, 4  ;;  %v1655_v53 = vrot.slane %v1648_v37, 4 }
 0x58d   : > { %v1649_v55 = vrot.slane %v1632_v47, 4  ;;  %v1651_v56 = vrot.slane %v1636_v51, 4  ;;  %v1656_v58 = vsel %vm631_vm9, 0.0, %v1655_v53  ;;  %v1668_v32 = vsel %vm631_vm9, %v1655_v53, %v1644_v43 }
 0x58e   : > { %v1673_v60 = vrot.slane %v1656_v58, 4  ;;  %v1654_v4 = vsel %vm631_vm9, 0.0, %v1653_v48  ;;  %v1672_v7 = vperm.slane %v1668_v32, %v3005_v6  ;;  %v1327_v32 = vpop.permute.xlu1 %1326 }
 0x58f   : > { %v1652_v61 = vsel %vm631_vm9, 0.0, %v1651_v56  ;;  %v1657_v1 = vsel %vm631_vm9, %v1651_v56, %v1632_v47  ;;  %v1650_v8 = vsel %vm631_vm9, 0.0, %v1649_v55 }
 0x590   : > { %v1662_v2 = vrot.slane %v1652_v61, 4  ;;  %v1661_v63 = vperm.slane %v1657_v1, %v3005_v6  ;;  %v1674_v17 = vsel %vm631_vm9, %v1673_v60, %v1654_v4  ;;  %v1693_v10 = vrot.slane %v1672_v7, 4 }
 0x591   : > { %v1678_v9 = vperm.slane %v1674_v17, %v3005_v6 }
 0x592   : > { %v1663_v0 = vsel %vm631_vm9, %v1662_v2, %v1650_v8  ;;  %v1681_v11 = vrot.slane %v1661_v63, 4 }
 0x593   : > { %v1667_v12 = vperm.slane %v1663_v0, %v3005_v6  ;;  %v1694_v57 = vsel %vm631_vm9, %v1678_v9, %v1693_v10  ;;  %v1691_v46 = vrot.slane %v1678_v9, 4 }
 0x594   : > { %v1702_v3 = vperm.slane %v1694_v57, %v3015_v21 }
 0x595   : > { %1322 = vrot.lane.b32.xlu2 %v3377_v54, %s2858_s21  ;;  %v1682_v14 = vsel %vm631_vm9, %v1667_v12, %v1681_v11  ;;  %v1679_v62 = vrot.slane %v1667_v12, 4  ;;  %v1692_v5 = vsel %vm631_vm9, %v1691_v46, %v1672_v7 }
 0x596   : > { %v1690_v18 = vperm.slane %v1682_v14, %v3015_v21  ;;  %v1707_v19 = vrot.slane %v1702_v3, 4  ;;  %v1698_v22 = vperm.slane %v1692_v5, %v3015_v21 }
 0x597   : > { %v1680_v23 = vsel %vm631_vm9, %v1679_v62, %v1661_v63 }
 0x598   : > { %v1708_v24 = vsel %vm631_vm9, %v1707_v19, %v1690_v18  ;;  %v1686_v16 = vperm.slane %v1680_v23, %v3015_v21  ;;  %v1703_v25 = vrot.slane %v1698_v22, 4  ;;  %v1709_v20 = vrot.slane %v1690_v18, 4 }
 0x599   : > { %v1713_v26 = vpack.c.bf16 %v1708_v24, %v1708_v24 }
 0x59a   : > { %v1704_v54 = vsel %vm631_vm9, %v1703_v25, %v1686_v16  ;;  %v1710_v27 = vsel %vm631_vm9, %v1702_v3, %v1709_v20  ;;  %v1705_v42 = vrot.slane %v1686_v16, 4 }
 0x59b   : > { %v1894_v28 = vsel %vm1137_vm11, %v1713_v26, 0  ;;  %v1711_v29 = vpack.c.bf16 %v1704_v54, %v1704_v54  ;;  %v1714_v35 = vpack.c.bf16 %v1710_v27, %v1710_v27 }
 0x59c   : > { %1903 = vmatpush.bf16.msrb.mxu3 %v1894_v28  ;;  %v1706_v30 = vsel %vm631_vm9, %v1698_v22, %v1705_v42 }
 0x59d   : > { %1330 = vrot.lane.b32.xlu2 %v3370_v50, %s2859_s22  ;;  %v1856_v31 = vsel %vm1137_vm11, %v1711_v29, 0  ;;  %v1913_v33 = vsel %vm1137_vm11, %v1714_v35, 0  ;;  %v1712_v34 = vpack.c.bf16 %v1706_v30, %v1706_v30 }
 0x59e   : > { %1865 = vmatpush.bf16.msrb.mxu1 %v1856_v31  ;;  %1922 = vmatpush.bf16.msra.mxu0 %v1913_v33 }
 0x59f   : > { %v1875_v36 = vsel %vm1137_vm11, %v1712_v34, 0 }
 0x5a0   : > { %1884 = vmatpush.bf16.msrb.mxu2 %v1875_v36 }
 0x5d8   : > { %v1839_v38 = vpop.xlane.xlu0 %1838 }
 0x5d9   : > { %2767 = vrcp.f32 %v1839_v38 }
 0x5df   : > { %v2768_v39 = vpop.eup %2767 }
 0x5e0   : > { %v1847_v40 = vmul.f32 %v2768_v39, %v3386_v49  ;;  %v1836_v41 = vpop.xlane.xlu2 %1835 }
 0x5e1   : > { %2769 = vrcp.f32 %v1836_v41 }
 0x5e2   : > { %v1851_v43 = vpack.c.bf16 %v1847_v40, %v1847_v40 }
 0x5e4   : > { %2565 = vmatmul.msk.bf16.vlgmr.msra.gmra.mxu0 %vm997_vm10, %v1851_v43 }
 0x5e7   : > { %v2770_v50 = vpop.eup %2769 }
 0x5e8   : > { %v1846_v37 = vmul.f32 %v2770_v50, %v3390_v59  ;;  %v1833_v44 = vpop.xlane.xlu2 %1832 }
 0x5e9   : > { %2771 = vrcp.f32 %v1833_v44 }
 0x5ea   : > { %v1850_v45 = vpack.c.bf16 %v1846_v37, %v1846_v37 }
 0x5ec   : > { %2564 = vmatmul.msk.bf16.vlgmr.msrb.gmra.mxu3 %vm997_vm10, %v1850_v45 }
 0x5ef   : > { %v2772_v47 = vpop.eup %2771 }
 0x5f0   : > { %v1845_v51 = vmul.f32 %v2772_v47, %v3395_v13  ;;  %v1830_v48 = vpop.xlane.xlu2 %1829 }
 0x5f1   : > { %2773 = vrcp.f32 %v1830_v48 }
 0x5f2   : > { %v1849_v53 = vpack.c.bf16 %v1845_v51, %v1845_v51 }
 0x5f4   : > { %2563 = vmatmul.msk.bf16.vlgmr.msrb.gmra.mxu2 %vm997_vm10, %v1849_v53 }
 0x5f7   : > { %v2774_v49 = vpop.eup %2773 }
 0x5f8   : > { %v1844_v55 = vmul.f32 %v2774_v49, %v3399_v15  ;;  %v1323_v56 = vpop.permute.xlu2 %1322 }
 0x5f9   : > { %v1333_v59 = vsel %vm997_vm10, %v3373_v52, %v1323_v56 }
 0x5fa   : > { %v1848_v58 = vpack.c.bf16 %v1844_v55, %v1844_v55  ;;  %v1335_v13 = vsel %vm1334_vm12, %v1333_v59, %v1327_v32 }
 0x5fc   : > { %2562 = vmatmul.msk.bf16.vlgmr.msrb.gmra.mxu1 %vm997_vm10, %v1848_v58 }
 0x600   : > { %v1331_v60 = vpop.permute.xlu2 %1330 }
 0x601   : > { %v1337_v61 = vsel %vm1336_vm13, %v1335_v13, %v1331_v60 }
 0x602   : > { %1338 = vst.msk [vmem:[#allocation3] sm:$0xff] %vm602_vm8, %v1337_v61 }
 0x661   : > { %v1924_v4 = vpop.f32.mrf.mxu0 }
 0x662   : > { %v1940_v1 = vrot.slane %v1924_v4, 4 }
 0x669   : > { %v1926_v7 = vpop.f32.mrf.mxu0 }
 0x66f   : > { %v1905_v15 = vpop.f32.mrf.mxu3 }
 0x670   : > { %v1928_v17 = vrot.slane %v1905_v15, 4 }
 0x677   : > { %v1886_v2 = vpop.f32.mrf.mxu2  ;;  %v1907_v63 = vpop.f32.mrf.mxu3 }
 0x678   : > { %v1941_v8 = vsel %vm631_vm9, %v1940_v1, %v1886_v2  ;;  %v1942_v52 = vrot.slane %v1886_v2, 4 }
 0x679   : > { %v1947_v9 = vperm.slane %v1941_v8, %v3005_v6  ;;  %v1867_v10 = vpop.f32.mrf.mxu1  ;;  %v2637_v8 = vld [vmem:[%s2953_s30 + $0x8] sm:$0xff] }
 0x67a   : > { %v1943_v0 = vsel %vm631_vm9, %v1924_v4, %v1942_v52  ;;  %v1929_v11 = vsel %vm631_vm9, %v1928_v17, %v1867_v10  ;;  %v1930_v12 = vrot.slane %v1867_v10, 4  ;;  %2083 = vmatpush.bf16.msra.mxu1 %v2637_v8  ;;  %v2636_v52 = vld [vmem:[%s2953_s30] sm:$0xff] }
 0x67b   : > { %v1951_v57 = vperm.slane %v1943_v0, %v3005_v6  ;;  %v1952_v46 = vrot.slane %v1947_v9, 4  ;;  %v1935_v3 = vperm.slane %v1929_v11, %v3005_v6 }
 0x67c   : > { %v1931_v14 = vsel %vm631_vm9, %v1905_v15, %v1930_v12 }
 0x67d   : > { %v1964_v62 = vrot.slane %v1951_v57, 4  ;;  %v1939_v5 = vperm.slane %v1931_v14, %v3005_v6  ;;  %v1953_v18 = vsel %vm631_vm9, %v1952_v46, %v1935_v3  ;;  %v1954_v19 = vrot.slane %v1935_v3, 4  ;;  %v3515_v14 = vld [vmem:[%s2968_s26] sm:$0xff] }
 0x67e   : > { %v1959_v22 = vperm.slane %v1953_v18, %v3015_v21  ;;  %2084 = vmatpush.bf16.msra.mxu1 %v2636_v52  ;;  %v2147_v8 = vperm.slane %v3515_v14, 3 }
 0x67f   : > { %v1955_v23 = vsel %vm631_vm9, %v1947_v9, %v1954_v19  ;;  %v1965_v24 = vsel %vm631_vm9, %v1964_v62, %v1939_v5  ;;  %v1966_v16 = vrot.slane %v1939_v5, 4  ;;  %v1888_v25 = vpop.f32.mrf.mxu2  ;;  %v2061_v62 = vperm.slane %v3515_v14, 1  ;;  %v2790_v19 = vld [vmem:[#allocation2] sm:$0xff] }
 0x680   : > { %v1963_v20 = vperm.slane %v1955_v23, %v3015_v21  ;;  %v1971_v26 = vperm.slane %v1965_v24, %v3015_v21  ;;  %v1976_v28 = vrot.slane %v1959_v22, 4  ;;  %v2791_v25 = vld [vmem:[#allocation2 + $0x8] sm:$0xff] }
 0x681   : > { %v1967_v54 = vsel %vm631_vm9, %v1951_v57, %v1966_v16  ;;  %v1869_v27 = vpop.f32.mrf.mxu1  ;;  %v2054_v57 = vld [vmem:[#allocation3] sm:$0xff] }
 0x682   : > { %v1975_v42 = vperm.slane %v1967_v54, %v3015_v21  ;;  %v1978_v29 = vrot.slane %v1963_v20, 4  ;;  %v1980_v30 = vrot.slane %v1971_v26, 4  ;;  %v1977_v34 = vsel %vm631_vm9, 0.0, %v1976_v28 }
 0x683   : > { %v2860_v54 = vmov 32.0  }
 0x684   : > { %v1979_v35 = vsel %vm631_vm9, 0.0, %v1978_v29  ;;  %v1982_v31 = vrot.slane %v1975_v42, 4  ;;  %v1984_v39 = vsel %vm631_vm9, %v1978_v29, %v1959_v22  ;;  %v1981_v50 = vsel %vm631_vm9, 0.0, %v1980_v30 }
 0x685   : > { %v1989_v33 = vrot.slane %v1979_v35, 4  ;;  %v1988_v45 = vperm.slane %v1984_v39, %v3005_v6  ;;  %2775 = vrcp.f32 %v2860_v54 }
 0x686   : > { %v1983_v36 = vsel %vm631_vm9, 0.0, %v1982_v31  ;;  %v1995_v38 = vsel %vm631_vm9, %v1982_v31, %v1971_v26 }
 0x687   : > { %v1990_v40 = vsel %vm631_vm9, %v1989_v33, %v1977_v34  ;;  %v2000_v41 = vrot.slane %v1983_v36, 4  ;;  %v1999_v43 = vperm.slane %v1995_v38, %v3005_v6  ;;  %v2008_v60 = vrot.slane %v1988_v45, 4 }
 0x688   : > { %v1994_v37 = vperm.slane %v1990_v40, %v3005_v6 }
 0x689   : > { %v2001_v44 = vsel %vm631_vm9, %v2000_v41, %v1981_v50  ;;  %v2020_v48 = vrot.slane %v1999_v43, 4 }
 0x68a   : > { %v2005_v47 = vperm.slane %v2001_v44, %v3005_v6  ;;  %v2006_v51 = vrot.slane %v1994_v37, 4  ;;  %v2009_v7 = vsel %vm631_vm9, %v1994_v37, %v2008_v60 }
 0x68b   : > { %v2017_v1 = vperm.slane %v2009_v7, %v3015_v21  ;;  %v2776_v27 = vpop.eup %2775 }
 0x68c   : > { %v2007_v53 = vsel %vm631_vm9, %v2006_v51, %v1988_v45  ;;  %v2018_v49 = vrot.slane %v2005_v47, 4  ;;  %v2021_v58 = vsel %vm631_vm9, %v2005_v47, %v2020_v48  ;;  %v2100_v42 = vmul.f32 32.0, %v2776_v27  ;;  %v2639_v47 = vld [vmem:[%s2958_s14 + $0x8] sm:$0xff]  ;;  %v2638_v51 = vld [vmem:[%s2958_s14] sm:$0xff] }
 0x68d   : > { %v2013_v55 = vperm.slane %v2007_v53, %v3015_v21  ;;  %v2029_v61 = vperm.slane %v2021_v58, %v3015_v21  ;;  %v2036_v63 = vrot.slane %v2017_v1, 4  ;;  %vm2104_vm14 = vweird.f32 %v2776_v27  ;;  %2177 = vmatpush.bf16.msra.mxu2 %v2639_v47 }
 0x68e   : > { %v2019_v56 = vsel %vm631_vm9, %v2018_v49, %v1999_v43  ;;  %v2101_v28 = vsub.f32 1.0, %v2100_v42 }
 0x68f   : > { %v2025_v59 = vperm.slane %v2019_v56, %v3015_v21  ;;  %v2032_v32 = vrot.slane %v2013_v55, 4  ;;  %v2034_v15 = vrot.slane %v2029_v61, 4  ;;  %v2037_v17 = vsel %vm631_vm9, %v2029_v61, %v2036_v63 }
 0x690   : > { %v2102_v29 = vmul.f32 %v2776_v27, %v2101_v28 }
 0x691   : > { %v2030_v13 = vrot.slane %v2025_v59, 4  ;;  %v2033_v6 = vsel %vm631_vm9, %v2025_v59, %v2032_v32  ;;  %v2035_v2 = vsel %vm631_vm9, %v2034_v15, %v2017_v1  ;;  %2178 = vmatpush.bf16.msra.mxu2 %v2638_v51  ;;  %v2144_v1 = vperm.slane %v3515_v14, 2 }
 0x692   : > { %2039 = vrot.lane.b32.xlu1 %v2033_v6, %s2858_s21  ;;  %v2103_v35 = vadd.f32 %v2776_v27, %v2102_v29 }
 0x693   : > { %v2031_v4 = vsel %vm631_vm9, %v2030_v13, %v2013_v55 }
 0x694   : > { %v3520_v30 = vsel %vm2104_vm14, %v2776_v27, %v2103_v35 }
 0x69a   : > { %2043 = vrot.lane.b32.xlu1 %v2035_v2, %s2857_s18 }
 0x6a2   : > { %2047 = vrot.lane.b32.xlu1 %v2037_v17, %s2859_s22 }
 0x704   : > { %v2040_v9 = vpop.permute.xlu1 %2039 }
 0x705   : > { %v2050_v0 = vsel %vm997_vm10, %v2031_v4, %v2040_v9 }
 0x70c   : > { %v2044_v10 = vpop.permute.xlu1 %2043 }
 0x70d   : > { %v2051_v21 = vsel %vm1334_vm12, %v2050_v0, %v2044_v10 }
 0x714   : > { %v2048_v11 = vpop.permute.xlu1 %2047 }
 0x715   : > { %v2052_v12 = vsel %vm1336_vm13, %v2051_v21, %v2048_v11 }
 0x716   : > { %2053 = vst.msk [vmem:[#allocation3 + $0x8] sm:$0xff] %vm602_vm8, %v2052_v12  ;;  %v2647_v12 = vld [vmem:[%s2963_s20 + $0x38] sm:$0xff] }
 0x717   : > { %2269 = vmatpush.bf16.msra.mxu3 %v2647_v12 }
 0x71d   : > { %v2055_v46 = vld [vmem:[#allocation3 + $0x8] sm:$0xff] }
 0x71e   : > { %v2056_v3 = vpack.c.bf16 %v2055_v46, %v2054_v57  ;;  %v2646_v57 = vld [vmem:[%s2963_s20 + $0x30] sm:$0xff]  ;;  %v2645_v46 = vld [vmem:[%s2963_s20 + $0x28] sm:$0xff] }
 0x71f   : > { %2270 = vmatpush.bf16.msra.mxu3 %v2646_v57 }
 0x720   : > { %2574 = vmatmul.msk.bf16.vlgmr.msra.gmra.mxu1 %vm602_vm8, %v2056_v3  ;;  %v2644_v3 = vld [vmem:[%s2963_s20 + $0x20] sm:$0xff] }
 0x723   : > { %2271 = vmatpush.bf16.msra.mxu3 %v2645_v46 }
 0x727   : > { %2272 = vmatpush.bf16.msra.mxu3 %v2644_v3  ;;  %v2329_v3 = vperm.slane %v3515_v14, 6 }
 0x79d   : > { %v2086_v5 = vpop.f32.mrf.mxu1 }
 0x79e   : > { %v2087_v18 = vadd.f32 %v2086_v5, %v2061_v62  ;;  %v2155_v5 = vperm.slane %v3515_v14, 4 }
 0x7a0   : > { %v2091_v22 = vadd.f32 %v2790_v19, %v2087_v18  ;;  %v2642_v18 = vld [vmem:[%s2963_s20 + $0x10] sm:$0xff] }
 0x7a2   : > { %v2093_v23 = vsel %vm602_vm8, %v2091_v22, 0.0 }
 0x7a3   : > { %2094 = vadd.xlane.f32.xlu2 %v2093_v23 }
 0x7a5   : > { %v2088_v24 = vpop.f32.mrf.mxu1 }
 0x7a6   : > { %v2089_v16 = vadd.f32 %v2088_v24, %v2061_v62  ;;  %v2643_v62 = vld [vmem:[%s2963_s20 + $0x18] sm:$0xff] }
 0x7a7   : > { %2273 = vmatpush.bf16.msra.mxu3 %v2643_v62 }
 0x7a8   : > { %v2092_v20 = vadd.f32 %v2791_v25, %v2089_v16  ;;  %v2640_v16 = vld [vmem:[%s2963_s20] sm:$0xff] }
 0x7aa   : > { %v2096_v26 = vsel %vm602_vm8, %v2092_v20, 0.0 }
 0x7ab   : > { %2097 = vadd.xlane.f32.xlu1 %v2096_v26  ;;  %2274 = vmatpush.bf16.msra.mxu3 %v2642_v18  ;;  %v2332_v18 = vperm.slane %v3515_v14, 7 }
 0x816   : > { %v2095_v31 = vpop.xlane.xlu2 %2094 }
 0x817   : > { %v2106_v33 = vmul.f32 %v3520_v30, %v2095_v31 }
 0x819   : > { %v2108_v34 = vsub.f32 %v2091_v22, %v2106_v33  ;;  %v2641_v22 = vld [vmem:[%s2963_s20 + $0x8] sm:$0xff] }
 0x81a   : > { %2275 = vmatpush.bf16.msra.mxu3 %v2641_v22 }
 0x81b   : > { %v2110_v36 = vmul.f32 %v2108_v34, %v2108_v34 }
 0x81d   : > { %v2112_v38 = vsel %vm602_vm8, %v2110_v36, 0.0 }
 0x81e   : > { %v2098_v39 = vpop.xlane.xlu1 %2097  ;;  %2113 = vadd.xlane.f32.xlu0 %v2112_v38  ;;  %2276 = vmatpush.bf16.msra.mxu3 %v2640_v16 }
 0x81f   : > { %v2107_v40 = vmul.f32 %v3520_v30, %v2098_v39 }
 0x821   : > { %v2109_v41 = vsub.f32 %v2092_v20, %v2107_v40 }
 0x823   : > { %v2111_v43 = vmul.f32 %v2109_v41, %v2109_v41 }
 0x825   : > { %v2115_v50 = vsel %vm602_vm8, %v2111_v43, 0.0 }
 0x826   : > { %2116 = vadd.xlane.f32.xlu0 %v2115_v50 }
 0x891   : > { %v2114_v37 = vpop.xlane.xlu0 %2113 }
 0x892   : > { %v2118_v44 = vmul.f32 %v2114_v37, %v3520_v30 }
 0x894   : > { %v2120_v45 = vadd.f32 1e-05, %v2118_v44  ;;  %v2220_v44 = vperm.slane %v3515_v14, 5 }
 0x896   : > { %2777 = vrsqrt.f32 %v2120_v45  ;;  %vm2128_vm0 = vweird.f32 %v2120_v45 }
 0x899   : > { %v2117_v48 = vpop.xlane.xlu0 %2116 }
 0x89a   : > { %v2119_v53 = vmul.f32 %v2117_v48, %v3520_v30 }
 0x89c   : > { %v2778_v49 = vpop.eup %2777  ;;  %v2121_v55 = vadd.f32 1e-05, %v2119_v53 }
 0x89d   : > { %v2123_v56 = vmul.f32 %v2778_v49, %v2120_v45  ;;  %vm2129_vm15 = vweird.f32 %v2778_v49 }
 0x89e   : > { %2779 = vrsqrt.f32 %v2121_v55  ;;  %vm2130_vm1 = vmor %vm2128_vm0, %vm2129_vm15  ;;  %vm2138_vm3 = vweird.f32 %v2121_v55 }
 0x89f   : > { %v2124_v58 = vmul.f32 %v2778_v49, %v2123_v56 }
 0x8a1   : > { %v2125_v59 = vmul.f32 0.5, %v2124_v58 }
 0x8a3   : > { %v2126_v32 = vsub.f32 1.5, %v2125_v59 }
 0x8a4   : > { %v2780_v60 = vpop.eup %2779 }
 0x8a5   : > { %v2127_v13 = vmul.f32 %v2778_v49, %v2126_v32  ;;  %v2133_v6 = vmul.f32 %v2780_v60, %v2121_v55  ;;  %vm2139_vm2 = vweird.f32 %v2780_v60 }
 0x8a6   : > { %vm2140_vm4 = vmor %vm2138_vm3, %vm2139_vm2 }
 0x8a7   : > { %v2134_v61 = vmul.f32 %v2780_v60, %v2133_v6  ;;  %v2131_v4 = vsel %vm2130_vm1, %v2778_v49, %v2127_v13 }
 0x8a8   : > { %v2142_v2 = vmul.f32 %v2131_v4, %v2108_v34 }
 0x8a9   : > { %v2135_v7 = vmul.f32 0.5, %v2134_v61 }
 0x8aa   : > { %v2145_v52 = vmul.f32 %v2144_v1, %v2142_v2 }
 0x8ab   : > { %v2136_v15 = vsub.f32 1.5, %v2135_v7 }
 0x8ac   : > { %v2148_v0 = vadd.f32 %v2147_v8, %v2145_v52 }
 0x8ad   : > { %v2137_v63 = vmul.f32 %v2780_v60, %v2136_v15 }
 0x8af   : > { %v2141_v17 = vsel %vm2140_vm4, %v2780_v60, %v2137_v63 }
 0x8b0   : > { %v2143_v9 = vmul.f32 %v2141_v17, %v2109_v41 }
 0x8b2   : > { %v2146_v10 = vmul.f32 %v2144_v1, %v2143_v9 }
 0x8b4   : > { %v2149_v21 = vadd.f32 %v2147_v8, %v2146_v10 }
 0x8b6   : > { %v2150_v11 = vpack.c.bf16 %v2149_v21, %v2148_v0 }
 0x8b8   : > { %2583 = vmatmul.msk.bf16.vlgmr.msra.gmra.mxu2 %vm602_vm8, %v2150_v11 }
 0x93b   : > { %v2180_v19 = vpop.f32.mrf.mxu2 }
 0x93c   : > { %v2181_v23 = vadd.f32 %v2180_v19, %v2155_v5 }
 0x93e   : > { %v2185_v24 = vmul.f32 %v2181_v23, %v2181_v23 }
 0x940   : > { %v2187_v25 = vmul.f32 %v2185_v24, %v2181_v23 }
 0x942   : > { %v2189_v20 = vmul.f32 0.044715, %v2187_v25 }
 0x943   : > { %v2182_v26 = vpop.f32.mrf.mxu2 }
 0x944   : > { %v2191_v54 = vadd.f32 %v2189_v20, %v2181_v23  ;;  %v2183_v27 = vadd.f32 %v2182_v26, %v2155_v5 }
 0x946   : > { %v2193_v42 = vmul.f32 0.7978846, %v2191_v54  ;;  %v2186_v28 = vmul.f32 %v2183_v27, %v2183_v27 }
 0x948   : > { %v2188_v29 = vmul.f32 %v2186_v28, %v2183_v27  ;;  %2781 = vtanh.f32 %v2193_v42 }
 0x94a   : > { %v2190_v35 = vmul.f32 0.044715, %v2188_v29 }
 0x94c   : > { %v2192_v31 = vadd.f32 %v2190_v35, %v2183_v27 }
 0x94e   : > { %v2194_v33 = vmul.f32 0.7978846, %v2192_v31  ;;  %v2782_v34 = vpop.eup %2781 }
 0x94f   : > { %v2197_v36 = vadd.f32 1.0, %v2782_v34 }
 0x950   : > { %2783 = vtanh.f32 %v2194_v33 }
 0x951   : > { %v2199_v39 = vmul.f32 0.5, %v2197_v36 }
 0x953   : > { %v2201_v43 = vmul.f32 %v2199_v39, %v2181_v23 }
 0x956   : > { %v2784_v38 = vpop.eup %2783 }
 0x957   : > { %v2198_v40 = vadd.f32 1.0, %v2784_v38 }
 0x959   : > { %v2200_v41 = vmul.f32 0.5, %v2198_v40 }
 0x95b   : > { %v2202_v50 = vmul.f32 %v2200_v41, %v2183_v27 }
 0x95d   : > { %v2203_v37 = vpack.c.bf16 %v2202_v50, %v2201_v43 }
 0x95f   : > { %2277 = vmatmul.bf16.vlgmr.msra.gmra.mxu3 %v2203_v37 }
 0x9e2   : > { %v2278_v45 = vpop.f32.mrf.mxu3 }
 0x9e3   : > { %v2279_v47 = vadd.f32 %v2278_v45, %v2220_v44 }
 0x9e5   : > { %v2283_v51 = vadd.f32 %v2279_v47, %v2148_v0 }
 0x9e7   : > { %v2285_v48 = vsel %vm602_vm8, %v2283_v51, 0.0 }
 0x9e8   : > { %2286 = vadd.xlane.f32.xlu0 %v2285_v48 }
 0x9ea   : > { %v2280_v53 = vpop.f32.mrf.mxu3 }
 0x9eb   : > { %v2281_v49 = vadd.f32 %v2280_v53, %v2220_v44 }
 0x9ed   : > { %v2284_v55 = vadd.f32 %v2281_v49, %v2149_v21 }
 0x9ef   : > { %v2288_v56 = vsel %vm602_vm8, %v2284_v55, 0.0 }
 0x9f0   : > { %2289 = vadd.xlane.f32.xlu0 %v2288_v56 }
 0xa5b   : > { %v2287_v58 = vpop.xlane.xlu0 %2286 }
 0xa5c   : > { %v2291_v59 = vmul.f32 %v2287_v58, %v3520_v30 }
 0xa5e   : > { %v2293_v32 = vsub.f32 %v2283_v51, %v2291_v59 }
 0xa60   : > { %v2295_v60 = vmul.f32 %v2293_v32, %v2293_v32 }
 0xa62   : > { %v2297_v13 = vsel %vm602_vm8, %v2295_v60, 0.0 }
 0xa63   : > { %2298 = vadd.xlane.f32.xlu0 %v2297_v13  ;;  %v2290_v6 = vpop.xlane.xlu0 %2289 }
 0xa64   : > { %v2292_v61 = vmul.f32 %v2290_v6, %v3520_v30 }
 0xa66   : > { %v2294_v4 = vsub.f32 %v2284_v55, %v2292_v61 }
 0xa68   : > { %v2296_v7 = vmul.f32 %v2294_v4, %v2294_v4 }
 0xa6a   : > { %v2300_v15 = vsel %vm602_vm8, %v2296_v7, 0.0 }
 0xa6b   : > { %2301 = vadd.xlane.f32.xlu2 %v2300_v15 }
 0xad6   : > { %v2299_v1 = vpop.xlane.xlu0 %2298 }
 0xad7   : > { %v2303_v2 = vmul.f32 %v2299_v1, %v3520_v30 }
 0xad9   : > { %v2305_v63 = vadd.f32 1e-05, %v2303_v2 }
 0xadb   : > { %2785 = vrsqrt.f32 %v2305_v63  ;;  %vm2313_vm6 = vweird.f32 %v2305_v63 }
 0xade   : > { %v2302_v17 = vpop.xlane.xlu2 %2301 }
 0xadf   : > { %v2304_v8 = vmul.f32 %v2302_v17, %v3520_v30 }
 0xae1   : > { %v2786_v52 = vpop.eup %2785  ;;  %v2306_v9 = vadd.f32 1e-05, %v2304_v8 }
 0xae2   : > { %v2308_v10 = vmul.f32 %v2786_v52, %v2305_v63  ;;  %vm2314_vm5 = vweird.f32 %v2786_v52 }
 0xae3   : > { %2787 = vrsqrt.f32 %v2306_v9  ;;  %vm2315_vm7 = vmor %vm2313_vm6, %vm2314_vm5  ;;  %vm2323_vm10 = vweird.f32 %v2306_v9 }
 0xae4   : > { %v2309_v0 = vmul.f32 %v2786_v52, %v2308_v10 }
 0xae6   : > { %v2310_v21 = vmul.f32 0.5, %v2309_v0 }
 0xae8   : > { %v2311_v11 = vsub.f32 1.5, %v2310_v21 }
 0xae9   : > { %v2788_v12 = vpop.eup %2787 }
 0xaea   : > { %v2312_v57 = vmul.f32 %v2786_v52, %v2311_v11  ;;  %v2318_v46 = vmul.f32 %v2788_v12, %v2306_v9  ;;  %vm2324_vm9 = vweird.f32 %v2788_v12 }
 0xaeb   : > { %vm2325_vm11 = vmor %vm2323_vm10, %vm2324_vm9 }
 0xaec   : > { %v2316_v62 = vsel %vm2315_vm7, %v2786_v52, %v2312_v57  ;;  %v2319_v5 = vmul.f32 %v2788_v12, %v2318_v46 }
 0xaed   : > { %v2327_v30 = vmul.f32 %v2316_v62, %v2293_v32 }
 0xaee   : > { %v2320_v19 = vmul.f32 0.5, %v2319_v5 }
 0xaef   : > { %v2330_v22 = vmul.f32 %v2329_v3, %v2327_v30 }
 0xaf0   : > { %v2321_v23 = vsub.f32 1.5, %v2320_v19 }
 0xaf1   : > { %v2333_v24 = vadd.f32 %v2332_v18, %v2330_v22 }
 0xaf2   : > { %v2322_v16 = vmul.f32 %v2788_v12, %v2321_v23 }
 0xaf3   : > { %2335 = vst.msk [vmem:[#allocation2] sm:$0xff] %vm602_vm8, %v2333_v24 }
 0xaf4   : > { %v2326_v25 = vsel %vm2325_vm11, %v2788_v12, %v2322_v16 }
 0xaf5   : > { %v2328_v20 = vmul.f32 %v2326_v25, %v2294_v4 }
 0xaf7   : > { %v2331_v26 = vmul.f32 %v2329_v3, %v2328_v20  ;;  %2340 = sbr.rel (%p2616_p6) target bundleno = 2955 (0xb8b), region = 72 }
 0xaf9   : > { %v2334_v54 = vadd.f32 %v2332_v18, %v2331_v26 }
 0xafb   : > { %2336 = vst.msk [vmem:[#allocation2 + $0x8] sm:$0xff] %vm602_vm8, %v2334_v54 }
 0xafc   : > { %v2649_v14 = vld [vmem:[%s3589_s9 + $0x8] sm:$0xff]  ;;  %v2341_v27 = vpack.c.bf16 %v2333_v24, %v2333_v24  ;;  %v2342_v42 = vpack.c.bf16 %v2334_v54, %v2334_v54  ;;  %v2648_v28 = vld [vmem:[%s3589_s9] sm:$0xff]  ;;  %vm2356_vm12 = vcmask 1041409  }
 0xafd   : > { %2380 = vmatpush.bf16.msra.mxu0 %v2649_v14  ;;  %v2792_v36 = vld [vmem:[%s3590_s10] ss:$0 sm:$0xff] }
 0xafe   : > { %v2353_v29 = vunpack.c.l.b16 %v2341_v27  ;;  %v2354_v35 = vunpack.c.l.b16 %v2342_v42 }
 0xb00   : > { %v2355_v31 = vrot.slane %v2354_v35, 7 }
 0xb01   : > { %2381 = vmatpush.bf16.msra.mxu0 %v2648_v28 }
 0xb02   : > { %v2357_v33 = vsel %vm2356_vm12, %v2355_v31, %v2353_v29 }
 0xb03   : > { %v2358_v34 = vpack.c.b16 %v2357_v33, %v2357_v33 }
 0xb05   : > { %2625 = vmatmul.msk.bf16.vlgmr.msra.gmra.mxu0 %vm602_vm8, %v2358_v34 }
 0xb82   : > { %v2383_v38 = vpop.f32.mrf.mxu0 }
 0xb83   : > { %v2384_v39 = vadd.f32 %v2792_v36, %v2383_v38 }
 0xb85   : > { %2387 = vst [vmem:[#allocation4] sm:$0x3] %v2384_v39 }
 0xb8a   : > { %v2385_v40 = vpop.f32.mrf.mxu0 }
 0xb8b PF: > { %s3595_s13 = sadd.s32 4294967295, %s2847_s19   ;;  %s2398_s27 = sshll.u32 %s3591_s11, 4  ;;  %s2399_s27 = int_to_ptr.hbm [resolvable:$true] %s2398_s27 }
 0xb8c   : > { %p2654_p7 = scmp.eq.s32.totalorder %s3595_s13, 1  ;;  %s2861_s25 = smov [#allocation4]  }
 0xb8d   : > { %s2396_s28 = sshll.u32 %s2861_s25, 4  ;;  %s2397_s28 = int_to_ptr.vmem [resolvable:$true] %s2396_s28 }
 0xb8e   : > { %2651 = dma.vmem_to_hbm [thread:$0]  (%p2654_p7), %s2397_s28, 32, %s2399_s27, [#allocation5]  }
 0xb8f   : > { %2834 = dma.done.wait (%p2654_p7), [#allocation5], 32  }
 0xb90   : > { %2836 = vsyncadd (%p2654_p7), [#allocation5], 4294967264 }
 0xb91 PF: > { %s22_s19 = sadd.s32 1, %s2847_s19   ;;  %s3596_s17 = sld [smem:[#allocation7_spill]] }
 0xb92   : > { %p19_p8 = scmp.ge.s32.totalorder %s22_s19, 4   ;;  %s3597_s18 = sld [smem:[#allocation8_spill]] }
 0xb94   :  { %21 = sbr.rel (!%p19_p8) target bundleno = 2 (0x2), region = 119 }
 0xb99   :  { %2412 = vsyncpa [#allocation5], 1 }
 0xb9a   :  { %2414 = vsyncpa [#allocation5 + $0x1], 1 }

</bundles_post_ra>
